<compile_context>
chip_gen: v5e
topology: v5e:2x2
jax: 0.10.0
libtpu: 0.0.40
codegen_flags: <defaults>
</compile_context>

<pallas_src>
import functools

import jax
import jax.numpy as jnp
from jax.experimental import pallas as pl
from jax.experimental.pallas import tpu as pltpu

_VMEM_LIMIT = 32 * 1024 * 1024  # scoped VMEM with headroom on v5e/v6e/v7x


def _pad128(n):
    return ((n + 127) // 128) * 128


# ----------------------------------------------------------------------------
# Pallas kernels
# ----------------------------------------------------------------------------
def _matmul_bias_kernel(x_ref, w_ref, b_ref, o_ref):
    # bf16 MXU matmul, f32 accumulate + bias.
    x = x_ref[...].astype(jnp.bfloat16)
    o_ref[...] = jnp.dot(x, w_ref[...], preferred_element_type=jnp.float32) + b_ref[...]


def _matmul_ln_kernel(x_ref, w_ref, b_ref, g_ref, bb_ref, o_ref, *, d_true):
    # Patchify matmul with a fused LayerNorm epilogue (post-stem norm).
    x = x_ref[...].astype(jnp.bfloat16)
    y = jnp.dot(x, w_ref[...], preferred_element_type=jnp.float32) + b_ref[...]
    # Padded lanes of y are exactly zero -> sums over all lanes / d_true are
    # the true-channel mean / E[y^2].
    mean = jnp.sum(y, axis=-1, keepdims=True) * (1.0 / d_true)
    var = jnp.sum(y * y, axis=-1, keepdims=True) * (1.0 / d_true) - mean * mean
    o_ref[...] = (y - mean) * jax.lax.rsqrt(var + 1e-5) * g_ref[...] + bb_ref[...]


def _ln_kernel(x_ref, g_ref, b_ref, o_ref, *, d_true):
    y = x_ref[...]
    mean = jnp.sum(y, axis=-1, keepdims=True) * (1.0 / d_true)
    var = jnp.sum(y * y, axis=-1, keepdims=True) * (1.0 / d_true) - mean * mean
    o_ref[...] = (y - mean) * jax.lax.rsqrt(var + 1e-5) * g_ref[...] + b_ref[...]


def _convnext_block_kernel(x_ref, dww_ref, dwb_ref, lng_ref, lnb_ref,
                           w1g_ref, b1g_ref, w2_ref, b2_ref,
                           o_ref, *, H, W, k, d_true):
    """Fused: depthwise KxK conv -> pre-LayerNorm -> gated MLP -> residual.

    Operates on one batch element of the (B, L, Cp) token tensor, L = H*W,
    entirely in token space (no in-kernel reshapes).  The depthwise conv's
    'same' zero padding is realized by concatenating zero rows in VMEM plus
    per-dx source-column masking, so no padded copy is ever materialized in
    HBM and only k (not k*k) masks are applied.
    """
    L = H * W
    Cp = x_ref.shape[-1]
    Fp = w2_ref.shape[0]        # padded hidden (feedforward) dim
    pad = (k - 1) // 2          # odd kernel_size assumed (7 default, 3 here)
    P = pad * (W + 1)           # enough zero rows for any (dy, dx) tap offset

    x = x_ref[0]                                      # (L, Cp) f32, residual input

    # ---- depthwise conv in token space -------------------------------------
    zpad = jnp.zeros((P, Cp), jnp.float32)
    col = jax.lax.broadcasted_iota(jnp.int32, (L, 1), 0) % W
    dww = dww_ref[...]                                # (k*k, Cp)
    acc = jnp.zeros((L, Cp), jnp.float32)
    for dx in range(-pad, pad + 1):
        # Masking the *source* columns once per dx is exactly equivalent to
        # masking each gathered contribution per (dy, dx): a wrap across the
        # row boundary lands on a source token whose own column violates the
        # same bound, and out-of-range rows land in the zero padding.
        if dx > 0:
            xm = jnp.where(col >= dx, x, 0.0)
        elif dx < 0:
            xm = jnp.where(col < W + dx, x, 0.0)
        else:
            xm = x
        xp = jnp.concatenate([zpad, xm, zpad], axis=0)    # (L + 2P, Cp)
        for dy in range(-pad, pad + 1):
            idx = (dy + pad) * k + (dx + pad)
            tap = dww[idx:idx + 1, :]                     # (1, Cp)
            off = P + dy * W + dx                         # static slice offset
            acc = acc + xp[off:off + L, :] * tap
    y = acc + dwb_ref[...]                                # (L, Cp), padded lanes == 0

    # ---- pre-LayerNorm over the true channel count --------------------------
    mean = jnp.sum(y, axis=-1, keepdims=True) * (1.0 / d_true)
    var = jnp.sum(y * y, axis=-1, keepdims=True) * (1.0 / d_true) - mean * mean
    xhat = (y - mean) * jax.lax.rsqrt(var + 1e-5) * lng_ref[...] + lnb_ref[...]

    # ---- gated MLP: SiLU(h) * SiLU(g), bf16 on the MXU, f32 accumulate ------
    # w1 and w_gate are fused into a single (Cp, 2*Fp) weight -> one matmul.
    xb = xhat.astype(jnp.bfloat16)
    hg = jnp.dot(xb, w1g_ref[...], preferred_element_type=jnp.float32) + b1g_ref[...]
    h = hg[:, :Fp]
    g = hg[:, Fp:]
    hidden = (jax.nn.silu(h) * jax.nn.silu(g)).astype(jnp.bfloat16)
    mlp = jnp.dot(hidden, w2_ref[...], preferred_element_type=jnp.float32) + b2_ref[...]

    # ---- residual ------------------------------------------------------------
    o_ref[0] = x + mlp


# ----------------------------------------------------------------------------
# pallas_call wrappers
# ----------------------------------------------------------------------------
def _tiled_rows_call(kernel, x, others, out_n, tm=256):
    """Row-tiled call: grid over row tiles, weight operands stay resident."""
    M, K = x.shape
    TM = M if M <= tm else tm
    grid = (pl.cdiv(M, TM),)
    in_specs = [pl.BlockSpec((TM, K), lambda i: (i, 0))] + [
        pl.BlockSpec(o.shape, (lambda i, n=o.ndim: (0,) * n)) for o in others
    ]
    return pl.pallas_call(
        kernel,
        grid=grid,
        in_specs=in_specs,
        out_specs=pl.BlockSpec((TM, out_n), lambda i: (i, 0)),
        out_shape=jax.ShapeDtypeStruct((M, out_n), jnp.float32),
        compiler_params=pltpu.CompilerParams(
            dimension_semantics=("parallel",),
            vmem_limit_bytes=_VMEM_LIMIT),
    )(x, *others)


def _im2col(x_nhwc, p):
    """stride==kernel patchify as a matmul lhs.
    TODO(synk): this reshape/transpose is still a host-side XLA relayout; a
    BlockSpec-driven patch gather would fold it into the kernel's DMA."""
    B, H, W, C = x_nhwc.shape
    Hg, Wg = H // p, W // p
    patches = (x_nhwc.reshape(B, Hg, p, Wg, p, C)
               .transpose(0, 1, 3, 2, 4, 5)
               .reshape(B * Hg * Wg, p * p * C))
    return patches, (B, Hg, Wg)


def stem_patchify_ln(x_nhwc, w, b, g, beta, p, d_true):
    """Stem Conv2d(kernel=stride=patch) + grid_to_tokens + LayerNorm, fused."""
    patches, (B, Hg, Wg) = _im2col(x_nhwc, p)
    kern = functools.partial(_matmul_ln_kernel, d_true=d_true)
    out = _tiled_rows_call(kern, patches, [w, b, g, beta], w.shape[1])
    return out.reshape(B, Hg * Wg, w.shape[1]), (Hg, Wg)


def downsample(tokens, size, w, b):
    """Downsample Conv2d(kernel=stride=2) on the token grid."""
    B, L, Cp = tokens.shape
    H, W = size
    grid = tokens.reshape(B, H, W, Cp)                # free relayout in HBM
    patches, (_, Hg, Wg) = _im2col(grid, 2)
    out = _tiled_rows_call(_matmul_bias_kernel, patches, [w, b], w.shape[1])
    return out.reshape(B, Hg * Wg, w.shape[1]), (Hg, Wg)


def layernorm_tokens(tokens, g, b, d_true):
    B, L, Cp = tokens.shape
    kern = functools.partial(_ln_kernel, d_true=d_true)
    out = _tiled_rows_call(kern, tokens.reshape(B * L, Cp), [g, b], Cp)
    return out.reshape(B, L, Cp)


def convnext_block(tokens, size, blk, k, d_true):
    """One fused ConvNextBlock. Grid over batch ("parallel" for v7x megacore).
    TODO(synk): for large H*W also tile rows of H (with k//2 halo rows) and
    the hidden dim with a pl.when-gated f32 scratch accumulator."""
    B, L, Cp = tokens.shape
    H, W = size
    kern = functools.partial(_convnext_block_kernel, H=H, W=W, k=k, d_true=d_true)
    weights = [blk["dw_w"], blk["dw_b"], blk["ln_g"], blk["ln_b"],
               blk["w1g"], blk["b1g"], blk["w2"], blk["b2"]]
    in_specs = [pl.BlockSpec((1, L, Cp), lambda bb: (bb, 0, 0))] + [
        pl.BlockSpec(w.shape, (lambda bb, n=w.ndim: (0,) * n)) for w in weights
    ]
    return pl.pallas_call(
        kern,
        grid=(B,),
        in_specs=in_specs,
        out_specs=pl.BlockSpec((1, L, Cp), lambda bb: (bb, 0, 0)),
        out_shape=jax.ShapeDtypeStruct((B, L, Cp), jnp.float32),
        compiler_params=pltpu.CompilerParams(
            dimension_semantics=("parallel",),
            vmem_limit_bytes=_VMEM_LIMIT),
    )(tokens, *weights)


# ----------------------------------------------------------------------------
# ConvNext forward (glue in plain JAX)
# ----------------------------------------------------------------------------
def convnext_forward(params, cfg, x_nchw):
    k = cfg["kernel_size"]
    p = cfg["patch_size"]
    dims = cfg["dims"]

    x = jnp.transpose(x_nchw, (0, 2, 3, 1)).astype(jnp.float32)        # NHWC
    tokens, size = stem_patchify_ln(                                   # stem + norm
        x, params["stem_w"], params["stem_b"],
        params["norm_g"], params["norm_b"], p, dims[0])
    B = tokens.shape[0]

    levels = []
    for i, blocks in enumerate(params["down_stages"]):
        for blk in blocks:
            tokens = convnext_block(tokens, size, blk, k, dims[i])
        levels.append(tokens)
        if i < len(params["downsample"]):
            tokens, size = downsample(tokens, size,
                                      params["downsample"][i]["w"],
                                      params["downsample"][i]["b"])
    levels.pop(-1)

    # TODO(synk): up_stages / ConvTranspose2d upsample path not exercised
    # (config default up_depths=[] makes those ModuleLists empty).

    tokens = layernorm_tokens(tokens, params["emb_g"], params["emb_b"], dims[-1])
    H, W = size
    out_nhwc = tokens[..., :dims[-1]].reshape(B, H, W, dims[-1])       # drop lane pad
    return jnp.transpose(out_nhwc, (0, 3, 1, 2))                       # back to NCHW


# ----------------------------------------------------------------------------
# Deterministic parameter init (synthetic; no checkpoint load).
# Channel dims are lane-padded to multiples of 128 with exact zeros so padded
# lanes stay zero through the whole network.  Matmul weights are bf16; the
# gated-MLP "up" and "gate" projections are stored pre-concatenated.
# NOTE: loading a real PyTorch checkpoint would require permuting Conv2d
# weights to (kh, kw, cin, cout) before flattening (im2col order used here).
# ----------------------------------------------------------------------------
def init_params(key, cfg):
    in_ch = cfg["in_channels"]
    dims = cfg["dims"]
    ffs = cfg["dims_feedforward"]
    depths = cfg["depths"]
    k = cfg["kernel_size"]
    p = cfg["patch_size"]

    keys = iter(jax.random.split(key, 512))

    def nrm(shape, scale=0.02):
        return scale * jax.random.normal(next(keys), shape, jnp.float32)

    def pad_cols(a, n_to):
        return jnp.pad(a, [(0, 0)] * (a.ndim - 1) + [(0, n_to - a.shape[-1])])

    def pad2(a, r_to, c_to):
        return jnp.pad(a, ((0, r_to - a.shape[0]), (0, c_to - a.shape[1])))

    P = [_pad128(d) for d in dims]
    PF = [_pad128(f) for f in ffs]

    params = {
        "stem_w": pad_cols(nrm((p * p * in_ch, dims[0])), P[0]).astype(jnp.bfloat16),
        "stem_b": jnp.zeros((1, P[0]), jnp.float32),
        "norm_g": pad_cols(jnp.ones((1, dims[0]), jnp.float32), P[0]),
        "norm_b": jnp.zeros((1, P[0]), jnp.float32),
    }

    stages = []
    for i, depth in enumerate(depths):
        d, f, dp, fp = dims[i], ffs[i], P[i], PF[i]
        blocks = []
        for _ in range(depth):
            w1 = pad2(nrm((d, f)), dp, fp)
            wg = pad2(nrm((d, f)), dp, fp)
            blocks.append({
                "dw_w": pad_cols(nrm((k * k, d)), dp),
                "dw_b": jnp.zeros((1, dp), jnp.float32),
                "ln_g": pad_cols(jnp.ones((1, d), jnp.float32), dp),
                "ln_b": jnp.zeros((1, dp), jnp.float32),
                # fused up+gate projection: (dp, 2*fp)
                "w1g": jnp.concatenate([w1, wg], axis=1).astype(jnp.bfloat16),
                "b1g": jnp.zeros((1, 2 * fp), jnp.float32),
                "w2": pad2(nrm((f, d)), fp, dp).astype(jnp.bfloat16),
                "b2": jnp.zeros((1, dp), jnp.float32),
            })
        stages.append(blocks)
    params["down_stages"] = stages

    downs = []
    for i in range(len(dims) - 1):
        w = jnp.zeros((2, 2, P[i], P[i + 1]), jnp.float32)
        w = w.at[:, :, :dims[i], :dims[i + 1]].set(
            nrm((2, 2, dims[i], dims[i + 1])))
        downs.append({
            "w": w.reshape(4 * P[i], P[i + 1]).astype(jnp.bfloat16),
            "b": jnp.zeros((1, P[i + 1]), jnp.float32),
        })
    params["downsample"] = downs

    params["emb_g"] = pad_cols(jnp.ones((1, dims[-1]), jnp.float32), P[-1])
    params["emb_b"] = jnp.zeros((1, P[-1]), jnp.float32)
    return params


# ----------------------------------------------------------------------------
if __name__ == "__main__":
    cfg = dict(
        in_channels=3,
        depths=[1, 1],
        dims=[32, 64],
        dims_feedforward=[64, 128],
        kernel_size=3,
        patch_size=4,
    )
    key = jax.random.PRNGKey(0)
    pkey, xkey = jax.random.split(key)
    params = init_params(pkey, cfg)
    x = jax.random.normal(xkey, (2, cfg["in_channels"], 16, 16), jnp.float32)

    fwd = jax.jit(lambda prm, xx: convnext_forward(prm, cfg, xx))
    out = jax.block_until_ready(fwd(params, x))
    assert out.shape == (2, cfg["dims"][-1], 2, 2), out.shape
    print("KERNEL_OK")
</pallas_src>

<mosaic_0001>
module attributes {stable_mosaic.version = 11 : i64} {
  func.func @_matmul_ln_kernel(%arg0: i32, %arg1: memref<32x48xf32, #tpu.memory_space<vmem>>, %arg2: memref<48x128xbf16, #tpu.memory_space<vmem>>, %arg3: memref<1x128xf32, #tpu.memory_space<vmem>>, %arg4: memref<1x128xf32, #tpu.memory_space<vmem>>, %arg5: memref<1x128xf32, #tpu.memory_space<vmem>>, %arg6: memref<32x128xf32, #tpu.memory_space<vmem>>) attributes {dimension_semantics = [#tpu.dimension_semantics<parallel>], iteration_bounds = array<i64: 1>, scalar_prefetch = 0 : i64, scratch_operands = 0 : i64, tpu.core_type = #tpu.core_type<tc>, window_params = [{transform_indices = @transform_0, window_bounds = array<i64: 32, 48>}, {pipeline_mode = #tpu.pipeline_mode<synchronous>, transform_indices = @transform_1, window_bounds = array<i64: 48, 128>}, {pipeline_mode = #tpu.pipeline_mode<synchronous>, transform_indices = @transform_2, window_bounds = array<i64: 1, 128>}, {pipeline_mode = #tpu.pipeline_mode<synchronous>, transform_indices = @transform_3, window_bounds = array<i64: 1, 128>}, {pipeline_mode = #tpu.pipeline_mode<synchronous>, transform_indices = @transform_4, window_bounds = array<i64: 1, 128>}, {transform_indices = @transform_5, window_bounds = array<i64: 32, 128>}]} {
    %c0 = arith.constant 0 : index
    %c0_0 = arith.constant 0 : index
    %0 = vector.load %arg1[%c0, %c0_0] : memref<32x48xf32, #tpu.memory_space<vmem>>, vector<32x48xf32>
    %1 = arith.truncf %0 : vector<32x48xf32> to vector<32x48xbf16>
    %c0_1 = arith.constant 0 : index
    %c0_2 = arith.constant 0 : index
    %2 = vector.load %arg2[%c0_1, %c0_2] : memref<48x128xbf16, #tpu.memory_space<vmem>>, vector<48x128xbf16>
    %cst = arith.constant dense<0.000000e+00> : vector<32x128xf32>
    %3 = tpu.matmul %1, %2, %cst {dimension_numbers = #tpu.dot_dimension_numbers<[1], [0], [0], [1], [0, 0, 1, 1], [], []>} : vector<32x48xbf16>, vector<48x128xbf16>, vector<32x128xf32> -> vector<32x128xf32>
    %c0_3 = arith.constant 0 : index
    %c0_4 = arith.constant 0 : index
    %4 = vector.load %arg3[%c0_3, %c0_4] : memref<1x128xf32, #tpu.memory_space<vmem>>, vector<1x128xf32>
    %5 = vector.broadcast %4 : vector<1x128xf32> to vector<32x128xf32>
    %6 = arith.addf %3, %5 : vector<32x128xf32>
    %cst_5 = arith.constant dense<0.000000e+00> : vector<32xf32>
    %7 = vector.multi_reduction <add>, %6, %cst_5 [1] : vector<32x128xf32> to vector<32xf32>
    %8 = vector.shape_cast %7 : vector<32xf32> to vector<32x1xf32>
    %cst_6 = arith.constant 3.125000e-02 : f32
    %9 = vector.broadcast %cst_6 : f32 to vector<32x1xf32>
    %10 = arith.mulf %8, %9 : vector<32x1xf32>
    %11 = arith.mulf %6, %6 : vector<32x128xf32>
    %cst_7 = arith.constant dense<0.000000e+00> : vector<32xf32>
    %12 = vector.multi_reduction <add>, %11, %cst_7 [1] : vector<32x128xf32> to vector<32xf32>
    %13 = vector.shape_cast %12 : vector<32xf32> to vector<32x1xf32>
    %cst_8 = arith.constant 3.125000e-02 : f32
    %14 = vector.broadcast %cst_8 : f32 to vector<32x1xf32>
    %15 = arith.mulf %13, %14 : vector<32x1xf32>
    %16 = arith.mulf %10, %10 : vector<32x1xf32>
    %17 = arith.subf %15, %16 : vector<32x1xf32>
    %18 = vector.broadcast %10 : vector<32x1xf32> to vector<32x128xf32>
    %19 = arith.subf %6, %18 : vector<32x128xf32>
    %cst_9 = arith.constant 9.99999974E-6 : f32
    %20 = vector.broadcast %cst_9 : f32 to vector<32x1xf32>
    %21 = arith.addf %17, %20 : vector<32x1xf32>
    %22 = math.rsqrt %21 : vector<32x1xf32>
    %23 = vector.broadcast %22 : vector<32x1xf32> to vector<32x128xf32>
    %24 = arith.mulf %19, %23 : vector<32x128xf32>
    %c0_10 = arith.constant 0 : index
    %c0_11 = arith.constant 0 : index
    %25 = vector.load %arg4[%c0_10, %c0_11] : memref<1x128xf32, #tpu.memory_space<vmem>>, vector<1x128xf32>
    %26 = vector.broadcast %25 : vector<1x128xf32> to vector<32x128xf32>
    %27 = arith.mulf %24, %26 : vector<32x128xf32>
    %c0_12 = arith.constant 0 : index
    %c0_13 = arith.constant 0 : index
    %28 = vector.load %arg5[%c0_12, %c0_13] : memref<1x128xf32, #tpu.memory_space<vmem>>, vector<1x128xf32>
    %29 = vector.broadcast %28 : vector<1x128xf32> to vector<32x128xf32>
    %30 = arith.addf %27, %29 : vector<32x128xf32>
    %c0_14 = arith.constant 0 : index
    %c0_15 = arith.constant 0 : index
    %31 = vector.load %arg6[%c0_14, %c0_15] : memref<32x128xf32, #tpu.memory_space<vmem>>, vector<32x128xf32>
    tpu.vector_store %arg6[%c0_14, %c0_15], %30 {strides = array<i32>} : memref<32x128xf32, #tpu.memory_space<vmem>>, vector<32x128xf32>,
    return
  }
  func.func @transform_0(%arg0: i32) -> (i32, i32) {
    %c0_i32 = arith.constant 0 : i32
    %c0_i32_0 = arith.constant 0 : i32
    return %arg0, %c0_i32 : i32, i32
  }
  func.func @transform_1(%arg0: i32) -> (i32, i32) {
    %c0_i32 = arith.constant 0 : i32
    %c0_i32_0 = arith.constant 0 : i32
    %c0_i32_1 = arith.constant 0 : i32
    return %c0_i32, %c0_i32_0 : i32, i32
  }
  func.func @transform_2(%arg0: i32) -> (i32, i32) {
    %c0_i32 = arith.constant 0 : i32
    %c0_i32_0 = arith.constant 0 : i32
    %c0_i32_1 = arith.constant 0 : i32
    return %c0_i32, %c0_i32_0 : i32, i32
  }
  func.func @transform_3(%arg0: i32) -> (i32, i32) {
    %c0_i32 = arith.constant 0 : i32
    %c0_i32_0 = arith.constant 0 : i32
    %c0_i32_1 = arith.constant 0 : i32
    return %c0_i32, %c0_i32_0 : i32, i32
  }
  func.func @transform_4(%arg0: i32) -> (i32, i32) {
    %c0_i32 = arith.constant 0 : i32
    %c0_i32_0 = arith.constant 0 : i32
    %c0_i32_1 = arith.constant 0 : i32
    return %c0_i32, %c0_i32_0 : i32, i32
  }
  func.func @transform_5(%arg0: i32) -> (i32, i32) {
    %c0_i32 = arith.constant 0 : i32
    %c0_i32_0 = arith.constant 0 : i32
    return %arg0, %c0_i32 : i32, i32
  }
}

module attributes {stable_mosaic.version = 11 : i64} {
  func.func @_convnext_block_kernel(%arg0: i32, %arg1: memref<1x16x128xf32, #tpu.memory_space<vmem>>, %arg2: memref<9x128xf32, #tpu.memory_space<vmem>>, %arg3: memref<1x128xf32, #tpu.memory_space<vmem>>, %arg4: memref<1x128xf32, #tpu.memory_space<vmem>>, %arg5: memref<1x128xf32, #tpu.memory_space<vmem>>, %arg6: memref<128x256xbf16, #tpu.memory_space<vmem>>, %arg7: memref<1x256xf32, #tpu.memory_space<vmem>>, %arg8: memref<128x128xbf16, #tpu.memory_space<vmem>>, %arg9: memref<1x128xf32, #tpu.memory_space<vmem>>, %arg10: memref<1x16x128xf32, #tpu.memory_space<vmem>>) attributes {dimension_semantics = [#tpu.dimension_semantics<parallel>], iteration_bounds = array<i64: 2>, scalar_prefetch = 0 : i64, scratch_operands = 0 : i64, tpu.core_type = #tpu.core_type<tc>, window_params = [{transform_indices = @transform_0, window_bounds = array<i64: 1, 16, 128>}, {pipeline_mode = #tpu.pipeline_mode<synchronous>, transform_indices = @transform_1, window_bounds = array<i64: 9, 128>}, {pipeline_mode = #tpu.pipeline_mode<synchronous>, transform_indices = @transform_2, window_bounds = array<i64: 1, 128>}, {pipeline_mode = #tpu.pipeline_mode<synchronous>, transform_indices = @transform_3, window_bounds = array<i64: 1, 128>}, {pipeline_mode = #tpu.pipeline_mode<synchronous>, transform_indices = @transform_4, window_bounds = array<i64: 1, 128>}, {pipeline_mode = #tpu.pipeline_mode<synchronous>, transform_indices = @transform_5, window_bounds = array<i64: 128, 256>}, {pipeline_mode = #tpu.pipeline_mode<synchronous>, transform_indices = @transform_6, window_bounds = array<i64: 1, 256>}, {pipeline_mode = #tpu.pipeline_mode<synchronous>, transform_indices = @transform_7, window_bounds = array<i64: 128, 128>}, {pipeline_mode = #tpu.pipeline_mode<synchronous>, transform_indices = @transform_8, window_bounds = array<i64: 1, 128>}, {transform_indices = @transform_9, window_bounds = array<i64: 1, 16, 128>}]} {
    %c0 = arith.constant 0 : index
    %c0_0 = arith.constant 0 : index
    %c0_1 = arith.constant 0 : index
    %0 = vector.load %arg1[%c0, %c0_0, %c0_1] : memref<1x16x128xf32, #tpu.memory_space<vmem>>, vector<1x16x128xf32>
    %1 = vector.shape_cast %0 : vector<1x16x128xf32> to vector<16x128xf32>
    %cst = arith.constant 0.000000e+00 : f32
    %2 = vector.broadcast %cst : f32 to vector<5x128xf32>
    %3 = tpu.iota {dimensions = array<i32: 0>} : vector<16x1xi32>
    %c4_i32 = arith.constant 4 : i32
    %c0_i32 = arith.constant 0 : i32
    %4 = arith.cmpi eq, %c4_i32, %c0_i32 : i32
    %c1_i32 = arith.constant 1 : i32
    %5 = arith.select %4, %c1_i32, %c4_i32 : i32
    %6 = vector.broadcast %5 : i32 to vector<16x1xi32>
    %7 = arith.remsi %3, %6 : vector<16x1xi32>
    %c0_i32_2 = arith.constant 0 : i32
    %8 = vector.broadcast %c0_i32_2 : i32 to vector<16x1xi32>
    %9 = arith.cmpi ne, %7, %8 : vector<16x1xi32>
    %c0_i32_3 = arith.constant 0 : i32
    %10 = vector.broadcast %c0_i32_3 : i32 to vector<16x1xi32>
    %11 = arith.cmpi slt, %7, %10 : vector<16x1xi32>
    %c0_i32_4 = arith.constant 0 : i32
    %12 = arith.cmpi slt, %5, %c0_i32_4 : i32
    %13 = vector.broadcast %12 : i1 to vector<16x1xi1>
    %14 = vector.broadcast %13 : vector<16x1xi1> to vector<16x1xi1>
    %15 = arith.xori %11, %14 : vector<16x1xi1>
    %16 = arith.andi %15, %9 : vector<16x1xi1>
    %17 = vector.broadcast %5 : i32 to vector<16x1xi32>
    %18 = arith.addi %7, %17 : vector<16x1xi32>
    %19 = arith.select %16, %18, %7 : vector<16x1xi1>, vector<16x1xi32>
    %c0_5 = arith.constant 0 : index
    %c0_6 = arith.constant 0 : index
    %20 = vector.load %arg2[%c0_5, %c0_6] : memref<9x128xf32, #tpu.memory_space<vmem>>, vector<9x128xf32>
    %cst_7 = arith.constant 0.000000e+00 : f32
    %21 = vector.broadcast %cst_7 : f32 to vector<16x128xf32>
    %c3_i32 = arith.constant 3 : i32
    %22 = vector.broadcast %c3_i32 : i32 to vector<16x1xi32>
    %23 = arith.cmpi slt, %19, %22 : vector<16x1xi32>
    %cst_8 = arith.constant 0.000000e+00 : f32
    %24 = vector.shape_cast %23 : vector<16x1xi1> to vector<16x1xi1>
    %25 = vector.broadcast %24 : vector<16x1xi1> to vector<16x128xi1>
    %26 = vector.broadcast %cst_8 : f32 to vector<16x128xf32>
    %27 = arith.select %25, %1, %26 : vector<16x128xi1>, vector<16x128xf32>
    %28 = tpu.concatenate %2, %27, %2 in 0 : vector<5x128xf32>, vector<16x128xf32>, vector<5x128xf32> -> vector<26x128xf32>
    %29 = vector.extract_strided_slice %20 {offsets = [0, 0], sizes = [1, 128], strides = [1, 1]} : vector<9x128xf32> to vector<1x128xf32>
    %30 = vector.extract_strided_slice %28 {offsets = [0, 0], sizes = [16, 128], strides = [1, 1]} : vector<26x128xf32> to vector<16x128xf32>
    %31 = vector.broadcast %29 : vector<1x128xf32> to vector<16x128xf32>
    %32 = arith.mulf %30, %31 : vector<16x128xf32>
    %33 = arith.addf %21, %32 : vector<16x128xf32>
    %34 = vector.extract_strided_slice %20 {offsets = [3, 0], sizes = [1, 128], strides = [1, 1]} : vector<9x128xf32> to vector<1x128xf32>
    %35 = vector.extract_strided_slice %28 {offsets = [4, 0], sizes = [16, 128], strides = [1, 1]} : vector<26x128xf32> to vector<16x128xf32>
    %36 = vector.broadcast %34 : vector<1x128xf32> to vector<16x128xf32>
    %37 = arith.mulf %35, %36 : vector<16x128xf32>
    %38 = arith.addf %33, %37 : vector<16x128xf32>
    %39 = vector.extract_strided_slice %20 {offsets = [6, 0], sizes = [1, 128], strides = [1, 1]} : vector<9x128xf32> to vector<1x128xf32>
    %40 = vector.extract_strided_slice %28 {offsets = [8, 0], sizes = [16, 128], strides = [1, 1]} : vector<26x128xf32> to vector<16x128xf32>
    %41 = vector.broadcast %39 : vector<1x128xf32> to vector<16x128xf32>
    %42 = arith.mulf %40, %41 : vector<16x128xf32>
    %43 = arith.addf %38, %42 : vector<16x128xf32>
    %44 = tpu.concatenate %2, %1, %2 in 0 : vector<5x128xf32>, vector<16x128xf32>, vector<5x128xf32> -> vector<26x128xf32>
    %45 = vector.extract_strided_slice %20 {offsets = [1, 0], sizes = [1, 128], strides = [1, 1]} : vector<9x128xf32> to vector<1x128xf32>
    %46 = vector.extract_strided_slice %44 {offsets = [1, 0], sizes = [16, 128], strides = [1, 1]} : vector<26x128xf32> to vector<16x128xf32>
    %47 = vector.broadcast %45 : vector<1x128xf32> to vector<16x128xf32>
    %48 = arith.mulf %46, %47 : vector<16x128xf32>
    %49 = arith.addf %43, %48 : vector<16x128xf32>
    %50 = vector.extract_strided_slice %20 {offsets = [4, 0], sizes = [1, 128], strides = [1, 1]} : vector<9x128xf32> to vector<1x128xf32>
    %51 = vector.extract_strided_slice %44 {offsets = [5, 0], sizes = [16, 128], strides = [1, 1]} : vector<26x128xf32> to vector<16x128xf32>
    %52 = vector.broadcast %50 : vector<1x128xf32> to vector<16x128xf32>
    %53 = arith.mulf %51, %52 : vector<16x128xf32>
    %54 = arith.addf %49, %53 : vector<16x128xf32>
    %55 = vector.extract_strided_slice %20 {offsets = [7, 0], sizes = [1, 128], strides = [1, 1]} : vector<9x128xf32> to vector<1x128xf32>
    %56 = vector.extract_strided_slice %44 {offsets = [9, 0], sizes = [16, 128], strides = [1, 1]} : vector<26x128xf32> to vector<16x128xf32>
    %57 = vector.broadcast %55 : vector<1x128xf32> to vector<16x128xf32>
    %58 = arith.mulf %56, %57 : vector<16x128xf32>
    %59 = arith.addf %54, %58 : vector<16x128xf32>
    %c1_i32_9 = arith.constant 1 : i32
    %60 = vector.broadcast %c1_i32_9 : i32 to vector<16x1xi32>
    %61 = arith.cmpi sge, %19, %60 : vector<16x1xi32>
    %cst_10 = arith.constant 0.000000e+00 : f32
    %62 = vector.shape_cast %61 : vector<16x1xi1> to vector<16x1xi1>
    %63 = vector.broadcast %62 : vector<16x1xi1> to vector<16x128xi1>
    %64 = vector.broadcast %cst_10 : f32 to vector<16x128xf32>
    %65 = arith.select %63, %1, %64 : vector<16x128xi1>, vector<16x128xf32>
    %66 = tpu.concatenate %2, %65, %2 in 0 : vector<5x128xf32>, vector<16x128xf32>, vector<5x128xf32> -> vector<26x128xf32>
    %67 = vector.extract_strided_slice %20 {offsets = [2, 0], sizes = [1, 128], strides = [1, 1]} : vector<9x128xf32> to vector<1x128xf32>
    %68 = vector.extract_strided_slice %66 {offsets = [2, 0], sizes = [16, 128], strides = [1, 1]} : vector<26x128xf32> to vector<16x128xf32>
    %69 = vector.broadcast %67 : vector<1x128xf32> to vector<16x128xf32>
    %70 = arith.mulf %68, %69 : vector<16x128xf32>
    %71 = arith.addf %59, %70 : vector<16x128xf32>
    %72 = vector.extract_strided_slice %20 {offsets = [5, 0], sizes = [1, 128], strides = [1, 1]} : vector<9x128xf32> to vector<1x128xf32>
    %73 = vector.extract_strided_slice %66 {offsets = [6, 0], sizes = [16, 128], strides = [1, 1]} : vector<26x128xf32> to vector<16x128xf32>
    %74 = vector.broadcast %72 : vector<1x128xf32> to vector<16x128xf32>
    %75 = arith.mulf %73, %74 : vector<16x128xf32>
    %76 = arith.addf %71, %75 : vector<16x128xf32>
    %77 = vector.extract_strided_slice %20 {offsets = [8, 0], sizes = [1, 128], strides = [1, 1]} : vector<9x128xf32> to vector<1x128xf32>
    %78 = vector.extract_strided_slice %66 {offsets = [10, 0], sizes = [16, 128], strides = [1, 1]} : vector<26x128xf32> to vector<16x128xf32>
    %79 = vector.broadcast %77 : vector<1x128xf32> to vector<16x128xf32>
    %80 = arith.mulf %78, %79 : vector<16x128xf32>
    %81 = arith.addf %76, %80 : vector<16x128xf32>
    %c0_11 = arith.constant 0 : index
    %c0_12 = arith.constant 0 : index
    %82 = vector.load %arg3[%c0_11, %c0_12] : memref<1x128xf32, #tpu.memory_space<vmem>>, vector<1x128xf32>
    %83 = vector.broadcast %82 : vector<1x128xf32> to vector<16x128xf32>
    %84 = arith.addf %81, %83 : vector<16x128xf32>
    %cst_13 = arith.constant dense<0.000000e+00> : vector<16xf32>
    %85 = vector.multi_reduction <add>, %84, %cst_13 [1] : vector<16x128xf32> to vector<16xf32>
    %86 = vector.shape_cast %85 : vector<16xf32> to vector<16x1xf32>
    %cst_14 = arith.constant 3.125000e-02 : f32
    %87 = vector.broadcast %cst_14 : f32 to vector<16x1xf32>
    %88 = arith.mulf %86, %87 : vector<16x1xf32>
    %89 = arith.mulf %84, %84 : vector<16x128xf32>
    %cst_15 = arith.constant dense<0.000000e+00> : vector<16xf32>
    %90 = vector.multi_reduction <add>, %89, %cst_15 [1] : vector<16x128xf32> to vector<16xf32>
    %91 = vector.shape_cast %90 : vector<16xf32> to vector<16x1xf32>
    %cst_16 = arith.constant 3.125000e-02 : f32
    %92 = vector.broadcast %cst_16 : f32 to vector<16x1xf32>
    %93 = arith.mulf %91, %92 : vector<16x1xf32>
    %94 = arith.mulf %88, %88 : vector<16x1xf32>
    %95 = arith.subf %93, %94 : vector<16x1xf32>
    %96 = vector.broadcast %88 : vector<16x1xf32> to vector<16x128xf32>
    %97 = arith.subf %84, %96 : vector<16x128xf32>
    %cst_17 = arith.constant 9.99999974E-6 : f32
    %98 = vector.broadcast %cst_17 : f32 to vector<16x1xf32>
    %99 = arith.addf %95, %98 : vector<16x1xf32>
    %100 = math.rsqrt %99 : vector<16x1xf32>
    %101 = vector.broadcast %100 : vector<16x1xf32> to vector<16x128xf32>
    %102 = arith.mulf %97, %101 : vector<16x128xf32>
    %c0_18 = arith.constant 0 : index
    %c0_19 = arith.constant 0 : index
    %103 = vector.load %arg4[%c0_18, %c0_19] : memref<1x128xf32, #tpu.memory_space<vmem>>, vector<1x128xf32>
    %104 = vector.broadcast %103 : vector<1x128xf32> to vector<16x128xf32>
    %105 = arith.mulf %102, %104 : vector<16x128xf32>
    %c0_20 = arith.constant 0 : index
    %c0_21 = arith.constant 0 : index
    %106 = vector.load %arg5[%c0_20, %c0_21] : memref<1x128xf32, #tpu.memory_space<vmem>>, vector<1x128xf32>
    %107 = vector.broadcast %106 : vector<1x128xf32> to vector<16x128xf32>
    %108 = arith.addf %105, %107 : vector<16x128xf32>
    %109 = arith.truncf %108 : vector<16x128xf32> to vector<16x128xbf16>
    %c0_22 = arith.constant 0 : index
    %c0_23 = arith.constant 0 : index
    %110 = vector.load %arg6[%c0_22, %c0_23] : memref<128x256xbf16, #tpu.memory_space<vmem>>, vector<128x256xbf16>
    %cst_24 = arith.constant dense<0.000000e+00> : vector<16x256xf32>
    %111 = tpu.matmul %109, %110, %cst_24 {dimension_numbers = #tpu.dot_dimension_numbers<[1], [0], [0], [1], [0, 0, 1, 1], [], []>} : vector<16x128xbf16>, vector<128x256xbf16>, vector<16x256xf32> -> vector<16x256xf32>
    %c0_25 = arith.constant 0 : index
    %c0_26 = arith.constant 0 : index
    %112 = vector.load %arg7[%c0_25, %c0_26] : memref<1x256xf32, #tpu.memory_space<vmem>>, vector<1x256xf32>
    %113 = vector.broadcast %112 : vector<1x256xf32> to vector<16x256xf32>
    %114 = arith.addf %111, %113 : vector<16x256xf32>
    %115 = vector.extract_strided_slice %114 {offsets = [0, 0], sizes = [16, 128], strides = [1, 1]} : vector<16x256xf32> to vector<16x128xf32>
    %116 = vector.extract_strided_slice %114 {offsets = [0, 128], sizes = [16, 128], strides = [1, 1]} : vector<16x256xf32> to vector<16x128xf32>
    %117 = arith.negf %115 : vector<16x128xf32>
    %118 = math.exp %117 : vector<16x128xf32>
    %cst_27 = arith.constant 1.000000e+00 : f32
    %119 = vector.broadcast %cst_27 : f32 to vector<16x128xf32>
    %120 = arith.addf %119, %118 : vector<16x128xf32>
    %121 = arith.divf %119, %120 : vector<16x128xf32>
    %122 = arith.mulf %115, %121 : vector<16x128xf32>
    %123 = arith.negf %116 : vector<16x128xf32>
    %124 = math.exp %123 : vector<16x128xf32>
    %cst_28 = arith.constant 1.000000e+00 : f32
    %125 = vector.broadcast %cst_28 : f32 to vector<16x128xf32>
    %126 = arith.addf %125, %124 : vector<16x128xf32>
    %127 = arith.divf %125, %126 : vector<16x128xf32>
    %128 = arith.mulf %116, %127 : vector<16x128xf32>
    %129 = arith.mulf %122, %128 : vector<16x128xf32>
    %130 = arith.truncf %129 : vector<16x128xf32> to vector<16x128xbf16>
    %c0_29 = arith.constant 0 : index
    %c0_30 = arith.constant 0 : index
    %131 = vector.load %arg8[%c0_29, %c0_30] : memref<128x128xbf16, #tpu.memory_space<vmem>>, vector<128x128xbf16>
    %cst_31 = arith.constant dense<0.000000e+00> : vector<16x128xf32>
    %132 = tpu.matmul %130, %131, %cst_31 {dimension_numbers = #tpu.dot_dimension_numbers<[1], [0], [0], [1], [0, 0, 1, 1], [], []>} : vector<16x128xbf16>, vector<128x128xbf16>, vector<16x128xf32> -> vector<16x128xf32>
    %c0_32 = arith.constant 0 : index
    %c0_33 = arith.constant 0 : index
    %133 = vector.load %arg9[%c0_32, %c0_33] : memref<1x128xf32, #tpu.memory_space<vmem>>, vector<1x128xf32>
    %134 = vector.broadcast %133 : vector<1x128xf32> to vector<16x128xf32>
    %135 = arith.addf %132, %134 : vector<16x128xf32>
    %136 = arith.addf %1, %135 : vector<16x128xf32>
    %c0_34 = arith.constant 0 : index
    %c0_35 = arith.constant 0 : index
    %c0_36 = arith.constant 0 : index
    %137 = vector.load %arg10[%c0_34, %c0_35, %c0_36] : memref<1x16x128xf32, #tpu.memory_space<vmem>>, vector<1x16x128xf32>
    %138 = vector.shape_cast %137 : vector<1x16x128xf32> to vector<16x128xf32>
    %139 = vector.shape_cast %136 : vector<16x128xf32> to vector<1x16x128xf32>
    tpu.vector_store %arg10[%c0_34, %c0_35, %c0_36], %139 {strides = array<i32>} : memref<1x16x128xf32, #tpu.memory_space<vmem>>, vector<1x16x128xf32>,
    return
  }
  func.func @transform_0(%arg0: i32) -> (i32, i32, i32) {
    %c0_i32 = arith.constant 0 : i32
    %c0_i32_0 = arith.constant 0 : i32
    %c0_i32_1 = arith.constant 0 : i32
    return %arg0, %c0_i32, %c0_i32_0 : i32, i32, i32
  }
  func.func @transform_1(%arg0: i32) -> (i32, i32) {
    %c0_i32 = arith.constant 0 : i32
    %c0_i32_0 = arith.constant 0 : i32
    %c0_i32_1 = arith.constant 0 : i32
    return %c0_i32, %c0_i32_0 : i32, i32
  }
  func.func @transform_2(%arg0: i32) -> (i32, i32) {
    %c0_i32 = arith.constant 0 : i32
    %c0_i32_0 = arith.constant 0 : i32
    %c0_i32_1 = arith.constant 0 : i32
    return %c0_i32, %c0_i32_0 : i32, i32
  }
  func.func @transform_3(%arg0: i32) -> (i32, i32) {
    %c0_i32 = arith.constant 0 : i32
    %c0_i32_0 = arith.constant 0 : i32
    %c0_i32_1 = arith.constant 0 : i32
    return %c0_i32, %c0_i32_0 : i32, i32
  }
  func.func @transform_4(%arg0: i32) -> (i32, i32) {
    %c0_i32 = arith.constant 0 : i32
    %c0_i32_0 = arith.constant 0 : i32
    %c0_i32_1 = arith.constant 0 : i32
    return %c0_i32, %c0_i32_0 : i32, i32
  }
  func.func @transform_5(%arg0: i32) -> (i32, i32) {
    %c0_i32 = arith.constant 0 : i32
    %c0_i32_0 = arith.constant 0 : i32
    %c0_i32_1 = arith.constant 0 : i32
    return %c0_i32, %c0_i32_0 : i32, i32
  }
  func.func @transform_6(%arg0: i32) -> (i32, i32) {
    %c0_i32 = arith.constant 0 : i32
    %c0_i32_0 = arith.constant 0 : i32
    %c0_i32_1 = arith.constant 0 : i32
    return %c0_i32, %c0_i32_0 : i32, i32
  }
  func.func @transform_7(%arg0: i32) -> (i32, i32) {
    %c0_i32 = arith.constant 0 : i32
    %c0_i32_0 = arith.constant 0 : i32
    %c0_i32_1 = arith.constant 0 : i32
    return %c0_i32, %c0_i32_0 : i32, i32
  }
  func.func @transform_8(%arg0: i32) -> (i32, i32) {
    %c0_i32 = arith.constant 0 : i32
    %c0_i32_0 = arith.constant 0 : i32
    %c0_i32_1 = arith.constant 0 : i32
    return %c0_i32, %c0_i32_0 : i32, i32
  }
  func.func @transform_9(%arg0: i32) -> (i32, i32, i32) {
    %c0_i32 = arith.constant 0 : i32
    %c0_i32_0 = arith.constant 0 : i32
    %c0_i32_1 = arith.constant 0 : i32
    return %arg0, %c0_i32, %c0_i32_0 : i32, i32, i32
  }
}

module attributes {stable_mosaic.version = 11 : i64} {
  func.func @_matmul_bias_kernel(%arg0: i32, %arg1: memref<8x512xf32, #tpu.memory_space<vmem>>, %arg2: memref<512x128xbf16, #tpu.memory_space<vmem>>, %arg3: memref<1x128xf32, #tpu.memory_space<vmem>>, %arg4: memref<8x128xf32, #tpu.memory_space<vmem>>) attributes {dimension_semantics = [#tpu.dimension_semantics<parallel>], iteration_bounds = array<i64: 1>, scalar_prefetch = 0 : i64, scratch_operands = 0 : i64, tpu.core_type = #tpu.core_type<tc>, window_params = [{transform_indices = @transform_0, window_bounds = array<i64: 8, 512>}, {pipeline_mode = #tpu.pipeline_mode<synchronous>, transform_indices = @transform_1, window_bounds = array<i64: 512, 128>}, {pipeline_mode = #tpu.pipeline_mode<synchronous>, transform_indices = @transform_2, window_bounds = array<i64: 1, 128>}, {transform_indices = @transform_3, window_bounds = array<i64: 8, 128>}]} {
    %c0 = arith.constant 0 : index
    %c0_0 = arith.constant 0 : index
    %0 = vector.load %arg1[%c0, %c0_0] : memref<8x512xf32, #tpu.memory_space<vmem>>, vector<8x512xf32>
    %1 = arith.truncf %0 : vector<8x512xf32> to vector<8x512xbf16>
    %c0_1 = arith.constant 0 : index
    %c0_2 = arith.constant 0 : index
    %2 = vector.load %arg2[%c0_1, %c0_2] : memref<512x128xbf16, #tpu.memory_space<vmem>>, vector<512x128xbf16>
    %cst = arith.constant dense<0.000000e+00> : vector<8x128xf32>
    %3 = tpu.matmul %1, %2, %cst {dimension_numbers = #tpu.dot_dimension_numbers<[1], [0], [0], [1], [0, 0, 1, 1], [], []>} : vector<8x512xbf16>, vector<512x128xbf16>, vector<8x128xf32> -> vector<8x128xf32>
    %c0_3 = arith.constant 0 : index
    %c0_4 = arith.constant 0 : index
    %4 = vector.load %arg3[%c0_3, %c0_4] : memref<1x128xf32, #tpu.memory_space<vmem>>, vector<1x128xf32>
    %5 = vector.broadcast %4 : vector<1x128xf32> to vector<8x128xf32>
    %6 = arith.addf %3, %5 : vector<8x128xf32>
    %c0_5 = arith.constant 0 : index
    %c0_6 = arith.constant 0 : index
    %7 = vector.load %arg4[%c0_5, %c0_6] : memref<8x128xf32, #tpu.memory_space<vmem>>, vector<8x128xf32>
    tpu.vector_store %arg4[%c0_5, %c0_6], %6 {strides = array<i32>} : memref<8x128xf32, #tpu.memory_space<vmem>>, vector<8x128xf32>,
    return
  }
  func.func @transform_0(%arg0: i32) -> (i32, i32) {
    %c0_i32 = arith.constant 0 : i32
    %c0_i32_0 = arith.constant 0 : i32
    return %arg0, %c0_i32 : i32, i32
  }
  func.func @transform_1(%arg0: i32) -> (i32, i32) {
    %c0_i32 = arith.constant 0 : i32
    %c0_i32_0 = arith.constant 0 : i32
    %c0_i32_1 = arith.constant 0 : i32
    return %c0_i32, %c0_i32_0 : i32, i32
  }
  func.func @transform_2(%arg0: i32) -> (i32, i32) {
    %c0_i32 = arith.constant 0 : i32
    %c0_i32_0 = arith.constant 0 : i32
    %c0_i32_1 = arith.constant 0 : i32
    return %c0_i32, %c0_i32_0 : i32, i32
  }
  func.func @transform_3(%arg0: i32) -> (i32, i32) {
    %c0_i32 = arith.constant 0 : i32
    %c0_i32_0 = arith.constant 0 : i32
    return %arg0, %c0_i32 : i32, i32
  }
}

module attributes {stable_mosaic.version = 11 : i64} {
  func.func @_convnext_block_kernel(%arg0: i32, %arg1: memref<1x4x128xf32, #tpu.memory_space<vmem>>, %arg2: memref<9x128xf32, #tpu.memory_space<vmem>>, %arg3: memref<1x128xf32, #tpu.memory_space<vmem>>, %arg4: memref<1x128xf32, #tpu.memory_space<vmem>>, %arg5: memref<1x128xf32, #tpu.memory_space<vmem>>, %arg6: memref<128x256xbf16, #tpu.memory_space<vmem>>, %arg7: memref<1x256xf32, #tpu.memory_space<vmem>>, %arg8: memref<128x128xbf16, #tpu.memory_space<vmem>>, %arg9: memref<1x128xf32, #tpu.memory_space<vmem>>, %arg10: memref<1x4x128xf32, #tpu.memory_space<vmem>>) attributes {dimension_semantics = [#tpu.dimension_semantics<parallel>], iteration_bounds = array<i64: 2>, scalar_prefetch = 0 : i64, scratch_operands = 0 : i64, tpu.core_type = #tpu.core_type<tc>, window_params = [{transform_indices = @transform_0, window_bounds = array<i64: 1, 4, 128>}, {pipeline_mode = #tpu.pipeline_mode<synchronous>, transform_indices = @transform_1, window_bounds = array<i64: 9, 128>}, {pipeline_mode = #tpu.pipeline_mode<synchronous>, transform_indices = @transform_2, window_bounds = array<i64: 1, 128>}, {pipeline_mode = #tpu.pipeline_mode<synchronous>, transform_indices = @transform_3, window_bounds = array<i64: 1, 128>}, {pipeline_mode = #tpu.pipeline_mode<synchronous>, transform_indices = @transform_4, window_bounds = array<i64: 1, 128>}, {pipeline_mode = #tpu.pipeline_mode<synchronous>, transform_indices = @transform_5, window_bounds = array<i64: 128, 256>}, {pipeline_mode = #tpu.pipeline_mode<synchronous>, transform_indices = @transform_6, window_bounds = array<i64: 1, 256>}, {pipeline_mode = #tpu.pipeline_mode<synchronous>, transform_indices = @transform_7, window_bounds = array<i64: 128, 128>}, {pipeline_mode = #tpu.pipeline_mode<synchronous>, transform_indices = @transform_8, window_bounds = array<i64: 1, 128>}, {transform_indices = @transform_9, window_bounds = array<i64: 1, 4, 128>}]} {
    %c0 = arith.constant 0 : index
    %c0_0 = arith.constant 0 : index
    %c0_1 = arith.constant 0 : index
    %0 = vector.load %arg1[%c0, %c0_0, %c0_1] : memref<1x4x128xf32, #tpu.memory_space<vmem>>, vector<1x4x128xf32>
    %1 = vector.shape_cast %0 : vector<1x4x128xf32> to vector<4x128xf32>
    %cst = arith.constant 0.000000e+00 : f32
    %2 = vector.broadcast %cst : f32 to vector<3x128xf32>
    %3 = tpu.iota {dimensions = array<i32: 0>} : vector<4x1xi32>
    %c2_i32 = arith.constant 2 : i32
    %c0_i32 = arith.constant 0 : i32
    %4 = arith.cmpi eq, %c2_i32, %c0_i32 : i32
    %c1_i32 = arith.constant 1 : i32
    %5 = arith.select %4, %c1_i32, %c2_i32 : i32
    %6 = vector.broadcast %5 : i32 to vector<4x1xi32>
    %7 = arith.remsi %3, %6 : vector<4x1xi32>
    %c0_i32_2 = arith.constant 0 : i32
    %8 = vector.broadcast %c0_i32_2 : i32 to vector<4x1xi32>
    %9 = arith.cmpi ne, %7, %8 : vector<4x1xi32>
    %c0_i32_3 = arith.constant 0 : i32
    %10 = vector.broadcast %c0_i32_3 : i32 to vector<4x1xi32>
    %11 = arith.cmpi slt, %7, %10 : vector<4x1xi32>
    %c0_i32_4 = arith.constant 0 : i32
    %12 = arith.cmpi slt, %5, %c0_i32_4 : i32
    %13 = vector.broadcast %12 : i1 to vector<4x1xi1>
    %14 = vector.broadcast %13 : vector<4x1xi1> to vector<4x1xi1>
    %15 = arith.xori %11, %14 : vector<4x1xi1>
    %16 = arith.andi %15, %9 : vector<4x1xi1>
    %17 = vector.broadcast %5 : i32 to vector<4x1xi32>
    %18 = arith.addi %7, %17 : vector<4x1xi32>
    %19 = arith.select %16, %18, %7 : vector<4x1xi1>, vector<4x1xi32>
    %c0_5 = arith.constant 0 : index
    %c0_6 = arith.constant 0 : index
    %20 = vector.load %arg2[%c0_5, %c0_6] : memref<9x128xf32, #tpu.memory_space<vmem>>, vector<9x128xf32>
    %cst_7 = arith.constant 0.000000e+00 : f32
    %21 = vector.broadcast %cst_7 : f32 to vector<4x128xf32>
    %c1_i32_8 = arith.constant 1 : i32
    %22 = vector.broadcast %c1_i32_8 : i32 to vector<4x1xi32>
    %23 = arith.cmpi slt, %19, %22 : vector<4x1xi32>
    %cst_9 = arith.constant 0.000000e+00 : f32
    %24 = vector.shape_cast %23 : vector<4x1xi1> to vector<4x1xi1>
    %25 = vector.broadcast %24 : vector<4x1xi1> to vector<4x128xi1>
    %26 = vector.broadcast %cst_9 : f32 to vector<4x128xf32>
    %27 = arith.select %25, %1, %26 : vector<4x128xi1>, vector<4x128xf32>
    %28 = tpu.concatenate %2, %27, %2 in 0 : vector<3x128xf32>, vector<4x128xf32>, vector<3x128xf32> -> vector<10x128xf32>
    %29 = vector.extract_strided_slice %20 {offsets = [0, 0], sizes = [1, 128], strides = [1, 1]} : vector<9x128xf32> to vector<1x128xf32>
    %30 = vector.extract_strided_slice %28 {offsets = [0, 0], sizes = [4, 128], strides = [1, 1]} : vector<10x128xf32> to vector<4x128xf32>
    %31 = vector.broadcast %29 : vector<1x128xf32> to vector<4x128xf32>
    %32 = arith.mulf %30, %31 : vector<4x128xf32>
    %33 = arith.addf %21, %32 : vector<4x128xf32>
    %34 = vector.extract_strided_slice %20 {offsets = [3, 0], sizes = [1, 128], strides = [1, 1]} : vector<9x128xf32> to vector<1x128xf32>
    %35 = vector.extract_strided_slice %28 {offsets = [2, 0], sizes = [4, 128], strides = [1, 1]} : vector<10x128xf32> to vector<4x128xf32>
    %36 = vector.broadcast %34 : vector<1x128xf32> to vector<4x128xf32>
    %37 = arith.mulf %35, %36 : vector<4x128xf32>
    %38 = arith.addf %33, %37 : vector<4x128xf32>
    %39 = vector.extract_strided_slice %20 {offsets = [6, 0], sizes = [1, 128], strides = [1, 1]} : vector<9x128xf32> to vector<1x128xf32>
    %40 = vector.extract_strided_slice %28 {offsets = [4, 0], sizes = [4, 128], strides = [1, 1]} : vector<10x128xf32> to vector<4x128xf32>
    %41 = vector.broadcast %39 : vector<1x128xf32> to vector<4x128xf32>
    %42 = arith.mulf %40, %41 : vector<4x128xf32>
    %43 = arith.addf %38, %42 : vector<4x128xf32>
    %44 = tpu.concatenate %2, %1, %2 in 0 : vector<3x128xf32>, vector<4x128xf32>, vector<3x128xf32> -> vector<10x128xf32>
    %45 = vector.extract_strided_slice %20 {offsets = [1, 0], sizes = [1, 128], strides = [1, 1]} : vector<9x128xf32> to vector<1x128xf32>
    %46 = vector.extract_strided_slice %44 {offsets = [1, 0], sizes = [4, 128], strides = [1, 1]} : vector<10x128xf32> to vector<4x128xf32>
    %47 = vector.broadcast %45 : vector<1x128xf32> to vector<4x128xf32>
    %48 = arith.mulf %46, %47 : vector<4x128xf32>
    %49 = arith.addf %43, %48 : vector<4x128xf32>
    %50 = vector.extract_strided_slice %20 {offsets = [4, 0], sizes = [1, 128], strides = [1, 1]} : vector<9x128xf32> to vector<1x128xf32>
    %51 = vector.extract_strided_slice %44 {offsets = [3, 0], sizes = [4, 128], strides = [1, 1]} : vector<10x128xf32> to vector<4x128xf32>
    %52 = vector.broadcast %50 : vector<1x128xf32> to vector<4x128xf32>
    %53 = arith.mulf %51, %52 : vector<4x128xf32>
    %54 = arith.addf %49, %53 : vector<4x128xf32>
    %55 = vector.extract_strided_slice %20 {offsets = [7, 0], sizes = [1, 128], strides = [1, 1]} : vector<9x128xf32> to vector<1x128xf32>
    %56 = vector.extract_strided_slice %44 {offsets = [5, 0], sizes = [4, 128], strides = [1, 1]} : vector<10x128xf32> to vector<4x128xf32>
    %57 = vector.broadcast %55 : vector<1x128xf32> to vector<4x128xf32>
    %58 = arith.mulf %56, %57 : vector<4x128xf32>
    %59 = arith.addf %54, %58 : vector<4x128xf32>
    %c1_i32_10 = arith.constant 1 : i32
    %60 = vector.broadcast %c1_i32_10 : i32 to vector<4x1xi32>
    %61 = arith.cmpi sge, %19, %60 : vector<4x1xi32>
    %cst_11 = arith.constant 0.000000e+00 : f32
    %62 = vector.shape_cast %61 : vector<4x1xi1> to vector<4x1xi1>
    %63 = vector.broadcast %62 : vector<4x1xi1> to vector<4x128xi1>
    %64 = vector.broadcast %cst_11 : f32 to vector<4x128xf32>
    %65 = arith.select %63, %1, %64 : vector<4x128xi1>, vector<4x128xf32>
    %66 = tpu.concatenate %2, %65, %2 in 0 : vector<3x128xf32>, vector<4x128xf32>, vector<3x128xf32> -> vector<10x128xf32>
    %67 = vector.extract_strided_slice %20 {offsets = [2, 0], sizes = [1, 128], strides = [1, 1]} : vector<9x128xf32> to vector<1x128xf32>
    %68 = vector.extract_strided_slice %66 {offsets = [2, 0], sizes = [4, 128], strides = [1, 1]} : vector<10x128xf32> to vector<4x128xf32>
    %69 = vector.broadcast %67 : vector<1x128xf32> to vector<4x128xf32>
    %70 = arith.mulf %68, %69 : vector<4x128xf32>
    %71 = arith.addf %59, %70 : vector<4x128xf32>
    %72 = vector.extract_strided_slice %20 {offsets = [5, 0], sizes = [1, 128], strides = [1, 1]} : vector<9x128xf32> to vector<1x128xf32>
    %73 = vector.extract_strided_slice %66 {offsets = [4, 0], sizes = [4, 128], strides = [1, 1]} : vector<10x128xf32> to vector<4x128xf32>
    %74 = vector.broadcast %72 : vector<1x128xf32> to vector<4x128xf32>
    %75 = arith.mulf %73, %74 : vector<4x128xf32>
    %76 = arith.addf %71, %75 : vector<4x128xf32>
    %77 = vector.extract_strided_slice %20 {offsets = [8, 0], sizes = [1, 128], strides = [1, 1]} : vector<9x128xf32> to vector<1x128xf32>
    %78 = vector.extract_strided_slice %66 {offsets = [6, 0], sizes = [4, 128], strides = [1, 1]} : vector<10x128xf32> to vector<4x128xf32>
    %79 = vector.broadcast %77 : vector<1x128xf32> to vector<4x128xf32>
    %80 = arith.mulf %78, %79 : vector<4x128xf32>
    %81 = arith.addf %76, %80 : vector<4x128xf32>
    %c0_12 = arith.constant 0 : index
    %c0_13 = arith.constant 0 : index
    %82 = vector.load %arg3[%c0_12, %c0_13] : memref<1x128xf32, #tpu.memory_space<vmem>>, vector<1x128xf32>
    %83 = vector.broadcast %82 : vector<1x128xf32> to vector<4x128xf32>
    %84 = arith.addf %81, %83 : vector<4x128xf32>
    %cst_14 = arith.constant dense<0.000000e+00> : vector<4xf32>
    %85 = vector.multi_reduction <add>, %84, %cst_14 [1] : vector<4x128xf32> to vector<4xf32>
    %86 = vector.shape_cast %85 : vector<4xf32> to vector<4x1xf32>
    %cst_15 = arith.constant 1.562500e-02 : f32
    %87 = vector.broadcast %cst_15 : f32 to vector<4x1xf32>
    %88 = arith.mulf %86, %87 : vector<4x1xf32>
    %89 = arith.mulf %84, %84 : vector<4x128xf32>
    %cst_16 = arith.constant dense<0.000000e+00> : vector<4xf32>
    %90 = vector.multi_reduction <add>, %89, %cst_16 [1] : vector<4x128xf32> to vector<4xf32>
    %91 = vector.shape_cast %90 : vector<4xf32> to vector<4x1xf32>
    %cst_17 = arith.constant 1.562500e-02 : f32
    %92 = vector.broadcast %cst_17 : f32 to vector<4x1xf32>
    %93 = arith.mulf %91, %92 : vector<4x1xf32>
    %94 = arith.mulf %88, %88 : vector<4x1xf32>
    %95 = arith.subf %93, %94 : vector<4x1xf32>
    %96 = vector.broadcast %88 : vector<4x1xf32> to vector<4x128xf32>
    %97 = arith.subf %84, %96 : vector<4x128xf32>
    %cst_18 = arith.constant 9.99999974E-6 : f32
    %98 = vector.broadcast %cst_18 : f32 to vector<4x1xf32>
    %99 = arith.addf %95, %98 : vector<4x1xf32>
    %100 = math.rsqrt %99 : vector<4x1xf32>
    %101 = vector.broadcast %100 : vector<4x1xf32> to vector<4x128xf32>
    %102 = arith.mulf %97, %101 : vector<4x128xf32>
    %c0_19 = arith.constant 0 : index
    %c0_20 = arith.constant 0 : index
    %103 = vector.load %arg4[%c0_19, %c0_20] : memref<1x128xf32, #tpu.memory_space<vmem>>, vector<1x128xf32>
    %104 = vector.broadcast %103 : vector<1x128xf32> to vector<4x128xf32>
    %105 = arith.mulf %102, %104 : vector<4x128xf32>
    %c0_21 = arith.constant 0 : index
    %c0_22 = arith.constant 0 : index
    %106 = vector.load %arg5[%c0_21, %c0_22] : memref<1x128xf32, #tpu.memory_space<vmem>>, vector<1x128xf32>
    %107 = vector.broadcast %106 : vector<1x128xf32> to vector<4x128xf32>
    %108 = arith.addf %105, %107 : vector<4x128xf32>
    %109 = arith.truncf %108 : vector<4x128xf32> to vector<4x128xbf16>
    %c0_23 = arith.constant 0 : index
    %c0_24 = arith.constant 0 : index
    %110 = vector.load %arg6[%c0_23, %c0_24] : memref<128x256xbf16, #tpu.memory_space<vmem>>, vector<128x256xbf16>
    %cst_25 = arith.constant dense<0.000000e+00> : vector<4x256xf32>
    %111 = tpu.matmul %109, %110, %cst_25 {dimension_numbers = #tpu.dot_dimension_numbers<[1], [0], [0], [1], [0, 0, 1, 1], [], []>} : vector<4x128xbf16>, vector<128x256xbf16>, vector<4x256xf32> -> vector<4x256xf32>
    %c0_26 = arith.constant 0 : index
    %c0_27 = arith.constant 0 : index
    %112 = vector.load %arg7[%c0_26, %c0_27] : memref<1x256xf32, #tpu.memory_space<vmem>>, vector<1x256xf32>
    %113 = vector.broadcast %112 : vector<1x256xf32> to vector<4x256xf32>
    %114 = arith.addf %111, %113 : vector<4x256xf32>
    %115 = vector.extract_strided_slice %114 {offsets = [0, 0], sizes = [4, 128], strides = [1, 1]} : vector<4x256xf32> to vector<4x128xf32>
    %116 = vector.extract_strided_slice %114 {offsets = [0, 128], sizes = [4, 128], strides = [1, 1]} : vector<4x256xf32> to vector<4x128xf32>
    %117 = arith.negf %115 : vector<4x128xf32>
    %118 = math.exp %117 : vector<4x128xf32>
    %cst_28 = arith.constant 1.000000e+00 : f32
    %119 = vector.broadcast %cst_28 : f32 to vector<4x128xf32>
    %120 = arith.addf %119, %118 : vector<4x128xf32>
    %121 = arith.divf %119, %120 : vector<4x128xf32>
    %122 = arith.mulf %115, %121 : vector<4x128xf32>
    %123 = arith.negf %116 : vector<4x128xf32>
    %124 = math.exp %123 : vector<4x128xf32>
    %cst_29 = arith.constant 1.000000e+00 : f32
    %125 = vector.broadcast %cst_29 : f32 to vector<4x128xf32>
    %126 = arith.addf %125, %124 : vector<4x128xf32>
    %127 = arith.divf %125, %126 : vector<4x128xf32>
    %128 = arith.mulf %116, %127 : vector<4x128xf32>
    %129 = arith.mulf %122, %128 : vector<4x128xf32>
    %130 = arith.truncf %129 : vector<4x128xf32> to vector<4x128xbf16>
    %c0_30 = arith.constant 0 : index
    %c0_31 = arith.constant 0 : index
    %131 = vector.load %arg8[%c0_30, %c0_31] : memref<128x128xbf16, #tpu.memory_space<vmem>>, vector<128x128xbf16>
    %cst_32 = arith.constant dense<0.000000e+00> : vector<4x128xf32>
    %132 = tpu.matmul %130, %131, %cst_32 {dimension_numbers = #tpu.dot_dimension_numbers<[1], [0], [0], [1], [0, 0, 1, 1], [], []>} : vector<4x128xbf16>, vector<128x128xbf16>, vector<4x128xf32> -> vector<4x128xf32>
    %c0_33 = arith.constant 0 : index
    %c0_34 = arith.constant 0 : index
    %133 = vector.load %arg9[%c0_33, %c0_34] : memref<1x128xf32, #tpu.memory_space<vmem>>, vector<1x128xf32>
    %134 = vector.broadcast %133 : vector<1x128xf32> to vector<4x128xf32>
    %135 = arith.addf %132, %134 : vector<4x128xf32>
    %136 = arith.addf %1, %135 : vector<4x128xf32>
    %c0_35 = arith.constant 0 : index
    %c0_36 = arith.constant 0 : index
    %c0_37 = arith.constant 0 : index
    %137 = vector.load %arg10[%c0_35, %c0_36, %c0_37] : memref<1x4x128xf32, #tpu.memory_space<vmem>>, vector<1x4x128xf32>
    %138 = vector.shape_cast %137 : vector<1x4x128xf32> to vector<4x128xf32>
    %139 = vector.shape_cast %136 : vector<4x128xf32> to vector<1x4x128xf32>
    tpu.vector_store %arg10[%c0_35, %c0_36, %c0_37], %139 {strides = array<i32>} : memref<1x4x128xf32, #tpu.memory_space<vmem>>, vector<1x4x128xf32>,
    return
  }
  func.func @transform_0(%arg0: i32) -> (i32, i32, i32) {
    %c0_i32 = arith.constant 0 : i32
    %c0_i32_0 = arith.constant 0 : i32
    %c0_i32_1 = arith.constant 0 : i32
    return %arg0, %c0_i32, %c0_i32_0 : i32, i32, i32
  }
  func.func @transform_1(%arg0: i32) -> (i32, i32) {
    %c0_i32 = arith.constant 0 : i32
    %c0_i32_0 = arith.constant 0 : i32
    %c0_i32_1 = arith.constant 0 : i32
    return %c0_i32, %c0_i32_0 : i32, i32
  }
  func.func @transform_2(%arg0: i32) -> (i32, i32) {
    %c0_i32 = arith.constant 0 : i32
    %c0_i32_0 = arith.constant 0 : i32
    %c0_i32_1 = arith.constant 0 : i32
    return %c0_i32, %c0_i32_0 : i32, i32
  }
  func.func @transform_3(%arg0: i32) -> (i32, i32) {
    %c0_i32 = arith.constant 0 : i32
    %c0_i32_0 = arith.constant 0 : i32
    %c0_i32_1 = arith.constant 0 : i32
    return %c0_i32, %c0_i32_0 : i32, i32
  }
  func.func @transform_4(%arg0: i32) -> (i32, i32) {
    %c0_i32 = arith.constant 0 : i32
    %c0_i32_0 = arith.constant 0 : i32
    %c0_i32_1 = arith.constant 0 : i32
    return %c0_i32, %c0_i32_0 : i32, i32
  }
  func.func @transform_5(%arg0: i32) -> (i32, i32) {
    %c0_i32 = arith.constant 0 : i32
    %c0_i32_0 = arith.constant 0 : i32
    %c0_i32_1 = arith.constant 0 : i32
    return %c0_i32, %c0_i32_0 : i32, i32
  }
  func.func @transform_6(%arg0: i32) -> (i32, i32) {
    %c0_i32 = arith.constant 0 : i32
    %c0_i32_0 = arith.constant 0 : i32
    %c0_i32_1 = arith.constant 0 : i32
    return %c0_i32, %c0_i32_0 : i32, i32
  }
  func.func @transform_7(%arg0: i32) -> (i32, i32) {
    %c0_i32 = arith.constant 0 : i32
    %c0_i32_0 = arith.constant 0 : i32
    %c0_i32_1 = arith.constant 0 : i32
    return %c0_i32, %c0_i32_0 : i32, i32
  }
  func.func @transform_8(%arg0: i32) -> (i32, i32) {
    %c0_i32 = arith.constant 0 : i32
    %c0_i32_0 = arith.constant 0 : i32
    %c0_i32_1 = arith.constant 0 : i32
    return %c0_i32, %c0_i32_0 : i32, i32
  }
  func.func @transform_9(%arg0: i32) -> (i32, i32, i32) {
    %c0_i32 = arith.constant 0 : i32
    %c0_i32_0 = arith.constant 0 : i32
    %c0_i32_1 = arith.constant 0 : i32
    return %arg0, %c0_i32, %c0_i32_0 : i32, i32, i32
  }
}

module attributes {stable_mosaic.version = 11 : i64} {
  func.func @_ln_kernel(%arg0: i32, %arg1: memref<8x128xf32, #tpu.memory_space<vmem>>, %arg2: memref<1x128xf32, #tpu.memory_space<vmem>>, %arg3: memref<1x128xf32, #tpu.memory_space<vmem>>, %arg4: memref<8x128xf32, #tpu.memory_space<vmem>>) attributes {dimension_semantics = [#tpu.dimension_semantics<parallel>], iteration_bounds = array<i64: 1>, scalar_prefetch = 0 : i64, scratch_operands = 0 : i64, tpu.core_type = #tpu.core_type<tc>, window_params = [{transform_indices = @transform_0, window_bounds = array<i64: 8, 128>}, {pipeline_mode = #tpu.pipeline_mode<synchronous>, transform_indices = @transform_1, window_bounds = array<i64: 1, 128>}, {pipeline_mode = #tpu.pipeline_mode<synchronous>, transform_indices = @transform_2, window_bounds = array<i64: 1, 128>}, {transform_indices = @transform_3, window_bounds = array<i64: 8, 128>}]} {
    %c0 = arith.constant 0 : index
    %c0_0 = arith.constant 0 : index
    %0 = vector.load %arg1[%c0, %c0_0] : memref<8x128xf32, #tpu.memory_space<vmem>>, vector<8x128xf32>
    %cst = arith.constant dense<0.000000e+00> : vector<8xf32>
    %1 = vector.multi_reduction <add>, %0, %cst [1] : vector<8x128xf32> to vector<8xf32>
    %2 = vector.shape_cast %1 : vector<8xf32> to vector<8x1xf32>
    %cst_1 = arith.constant 1.562500e-02 : f32
    %3 = vector.broadcast %cst_1 : f32 to vector<8x1xf32>
    %4 = arith.mulf %2, %3 : vector<8x1xf32>
    %5 = arith.mulf %0, %0 : vector<8x128xf32>
    %cst_2 = arith.constant dense<0.000000e+00> : vector<8xf32>
    %6 = vector.multi_reduction <add>, %5, %cst_2 [1] : vector<8x128xf32> to vector<8xf32>
    %7 = vector.shape_cast %6 : vector<8xf32> to vector<8x1xf32>
    %cst_3 = arith.constant 1.562500e-02 : f32
    %8 = vector.broadcast %cst_3 : f32 to vector<8x1xf32>
    %9 = arith.mulf %7, %8 : vector<8x1xf32>
    %10 = arith.mulf %4, %4 : vector<8x1xf32>
    %11 = arith.subf %9, %10 : vector<8x1xf32>
    %12 = vector.broadcast %4 : vector<8x1xf32> to vector<8x128xf32>
    %13 = arith.subf %0, %12 : vector<8x128xf32>
    %cst_4 = arith.constant 9.99999974E-6 : f32
    %14 = vector.broadcast %cst_4 : f32 to vector<8x1xf32>
    %15 = arith.addf %11, %14 : vector<8x1xf32>
    %16 = math.rsqrt %15 : vector<8x1xf32>
    %17 = vector.broadcast %16 : vector<8x1xf32> to vector<8x128xf32>
    %18 = arith.mulf %13, %17 : vector<8x128xf32>
    %c0_5 = arith.constant 0 : index
    %c0_6 = arith.constant 0 : index
    %19 = vector.load %arg2[%c0_5, %c0_6] : memref<1x128xf32, #tpu.memory_space<vmem>>, vector<1x128xf32>
    %20 = vector.broadcast %19 : vector<1x128xf32> to vector<8x128xf32>
    %21 = arith.mulf %18, %20 : vector<8x128xf32>
    %c0_7 = arith.constant 0 : index
    %c0_8 = arith.constant 0 : index
    %22 = vector.load %arg3[%c0_7, %c0_8] : memref<1x128xf32, #tpu.memory_space<vmem>>, vector<1x128xf32>
    %23 = vector.broadcast %22 : vector<1x128xf32> to vector<8x128xf32>
    %24 = arith.addf %21, %23 : vector<8x128xf32>
    %c0_9 = arith.constant 0 : index
    %c0_10 = arith.constant 0 : index
    %25 = vector.load %arg4[%c0_9, %c0_10] : memref<8x128xf32, #tpu.memory_space<vmem>>, vector<8x128xf32>
    tpu.vector_store %arg4[%c0_9, %c0_10], %24 {strides = array<i32>} : memref<8x128xf32, #tpu.memory_space<vmem>>, vector<8x128xf32>,
    return
  }
  func.func @transform_0(%arg0: i32) -> (i32, i32) {
    %c0_i32 = arith.constant 0 : i32
    %c0_i32_0 = arith.constant 0 : i32
    return %arg0, %c0_i32 : i32, i32
  }
  func.func @transform_1(%arg0: i32) -> (i32, i32) {
    %c0_i32 = arith.constant 0 : i32
    %c0_i32_0 = arith.constant 0 : i32
    %c0_i32_1 = arith.constant 0 : i32
    return %c0_i32, %c0_i32_0 : i32, i32
  }
  func.func @transform_2(%arg0: i32) -> (i32, i32) {
    %c0_i32 = arith.constant 0 : i32
    %c0_i32_0 = arith.constant 0 : i32
    %c0_i32_1 = arith.constant 0 : i32
    return %c0_i32, %c0_i32_0 : i32, i32
  }
  func.func @transform_3(%arg0: i32) -> (i32, i32) {
    %c0_i32 = arith.constant 0 : i32
    %c0_i32_0 = arith.constant 0 : i32
    return %arg0, %c0_i32 : i32, i32
  }
}

</mosaic_0001>

<bundles_post_ra>
// kernel: _lambda_.5
= control target key start
LH: loop header
LB: loop body
LE: loop exit
PB: predicated region body
PF: predicated region fallthrough
CT: control target
= control target key end

     0   :  { %vm55_vm0 = vcmask 392192   ;;  %s330_s1 = inlined_call_operand.vmem [shape: bf16[48,128], index: 1, kind: input, shape index: {}]   ;;  %s331_s2 = inlined_call_operand.vmem [shape: f32[1,128], index: 2, kind: input, shape index: {}]   ;;  %s332_s0 = inlined_call_operand.vmem [shape: f32[32,48], index: 0, kind: input, shape index: {}]   ;;  %s333_s3 = inlined_call_operand.vmem [shape: f32[1,128], index: 3, kind: input, shape index: {}]   ;;  %s334_s4 = inlined_call_operand.vmem [shape: f32[1,128], index: 4, kind: input, shape index: {}]   ;;  %s335_s5 = inlined_call_operand.vmem [shape: f32[32,128], index: 5, kind: output, shape index: {}]  }
   0x1   :  { %v209_v0 = vld [vmem:[%s330_s1 + $0x10] sm:$0xff]  ;;  %v208_v1 = vld [vmem:[%s330_s1 + $0x8] sm:$0xff]  ;;  %v207_v2 = vld [vmem:[%s330_s1] sm:$0xff] }
   0x2   :  { %67 = vmatpush.bf16.msra.mxu0 %v209_v0  ;;  %210 = vmatpush.bf16.msra.mxu1 %v209_v0  ;;  %v21_v3 = vld [vmem:[%s332_s0] sm:$0xff]  ;;  %v22_v4 = vld [vmem:[%s332_s0 + $0x8] sm:$0xff]  ;;  %v23_v5 = vld [vmem:[%s332_s0 + $0x10] sm:$0xff] }
   0x3   :  { %v24_v6 = vld [vmem:[%s332_s0 + $0x18] sm:$0xff]  ;;  %v25_v7 = vpack.c.bf16 %v22_v4, %v21_v3  ;;  %v213_v9 = vld [vmem:[%s331_s2] ss:$0 sm:$0xff] }
   0x4   :  { %v26_v8 = vpack.c.bf16 %v24_v6, %v23_v5  ;;  %v214_v59 = vld [vmem:[%s333_s3] ss:$0 sm:$0xff] }
   0x5   :  { %v215_v62 = vld [vmem:[%s334_s4] ss:$0 sm:$0xff] }
   0x6   :  { %68 = vmatpush.bf16.msra.mxu0 %v208_v1  ;;  %211 = vmatpush.bf16.msra.mxu1 %v208_v1 }
   0xa   :  { %69 = vmatpush.bf16.msra.mxu0 %v207_v2  ;;  %212 = vmatpush.bf16.msra.mxu1 %v207_v2 }
   0xd   :  { %205 = vmatmul.msk.bf16.vlgmr.msra.gmra.mxu0 %vm55_vm0, %v25_v7  ;;  %206 = vmatmul.msk.bf16.vlgmr.msra.gmra.mxu1 %vm55_vm0, %v26_v8 }
  0x8a   :  { %v71_v10 = vpop.f32.mrf.mxu0  ;;  %v76_v11 = vpop.f32.mrf.mxu1 }
  0x8b   :  { %v278_v12 = vadd.f32 %v213_v9, %v71_v10  ;;  %v280_v13 = vadd.f32 %v213_v9, %v76_v11 }
  0x8d   :  { %85 = vadd.xlane.f32.xlu1 %v280_v13  ;;  %81 = vadd.xlane.f32.xlu0 %v278_v12  ;;  %v93_v14 = vmul.f32 %v278_v12, %v278_v12  ;;  %v95_v21 = vmul.f32 %v280_v13, %v280_v13 }
  0x8f   :  { %97 = vadd.xlane.f32.xlu2 %v93_v14 }
  0x92   :  { %v73_v15 = vpop.f32.mrf.mxu0  ;;  %v78_v16 = vpop.f32.mrf.mxu1 }
  0x93   :  { %v286_v17 = vadd.f32 %v213_v9, %v73_v15  ;;  %v288_v18 = vadd.f32 %v213_v9, %v78_v16 }
  0x95   :  { %87 = vadd.xlane.f32.xlu1 %v288_v18  ;;  %83 = vadd.xlane.f32.xlu0 %v286_v17  ;;  %v94_v19 = vmul.f32 %v286_v17, %v286_v17  ;;  %v96_v20 = vmul.f32 %v288_v18, %v288_v18 }
  0x97   :  { %99 = vadd.xlane.f32.xlu2 %v94_v19 }
  0x9d   :  { %103 = vadd.xlane.f32.xlu1 %v96_v20  ;;  %101 = vadd.xlane.f32.xlu0 %v95_v21 }
 0x100   :  { %v86_v22 = vpop.xlane.xlu1 %85  ;;  %v82_v23 = vpop.xlane.xlu0 %81 }
 0x101   :  { %v89_v24 = vmul.f32 0.03125, %v82_v23  ;;  %v298_v35 = vmul.f32 0.03125, %v86_v22 }
 0x102   :  { %v98_v25 = vpop.xlane.xlu2 %97 }
 0x103   :  { %v109_v26 = vmul.f32 %v89_v24, %v89_v24  ;;  %v105_v27 = vmul.f32 0.03125, %v98_v25  ;;  %v111_v40 = vmul.f32 %v298_v35, %v298_v35  ;;  %v117_v58 = vsub.f32 %v278_v12, %v89_v24 }
 0x105   :  { %v113_v28 = vsub.f32 %v105_v27, %v109_v26 }
 0x107   :  { %v121_v29 = vadd.f32 1e-05, %v113_v28 }
 0x108   :  { %v88_v30 = vpop.xlane.xlu1 %87  ;;  %v84_v31 = vpop.xlane.xlu0 %83 }
 0x109   :  { %v90_v32 = vmul.f32 0.03125, %v84_v31  ;;  %216 = vrsqrt.f32 %v121_v29  ;;  %v300_v37 = vmul.f32 0.03125, %v88_v30  ;;  %vm131_vm2 = vweird.f32 %v121_v29 }
 0x10a   :  { %v100_v33 = vpop.xlane.xlu2 %99 }
 0x10b   :  { %v110_v34 = vmul.f32 %v90_v32, %v90_v32  ;;  %v106_v36 = vmul.f32 0.03125, %v100_v33  ;;  %v112_v45 = vmul.f32 %v300_v37, %v300_v37  ;;  %v118_v11 = vsub.f32 %v286_v17, %v90_v32 }
 0x10c   :  { %v120_v23 = vsub.f32 %v288_v18, %v300_v37  ;;  %v119_v17 = vsub.f32 %v280_v13, %v298_v35 }
 0x10d   :  { %v114_v38 = vsub.f32 %v106_v36, %v110_v34 }
 0x10f   :  { %v217_v39 = vpop.eup %216  ;;  %v122_v41 = vadd.f32 1e-05, %v114_v38 }
 0x110   :  { %v104_v42 = vpop.xlane.xlu1 %103  ;;  %v102_v43 = vpop.xlane.xlu0 %101  ;;  %v126_v44 = vmul.f32 %v217_v39, %v121_v29  ;;  %vm132_vm1 = vweird.f32 %v217_v39 }
 0x111   :  { %v108_v46 = vmul.f32 0.03125, %v104_v42  ;;  %v107_v47 = vmul.f32 0.03125, %v102_v43  ;;  %218 = vrsqrt.f32 %v122_v41  ;;  %vm133_vm3 = vmor %vm131_vm2, %vm132_vm1  ;;  %vm141_vm5 = vweird.f32 %v122_v41 }
 0x112   :  { %v127_v48 = vmul.f32 %v217_v39, %v126_v44 }
 0x113   :  { %v116_v49 = vsub.f32 %v108_v46, %v112_v45  ;;  %v115_v50 = vsub.f32 %v107_v47, %v111_v40 }
 0x114   :  { %v128_v51 = vmul.f32 0.5, %v127_v48 }
 0x115   :  { %v124_v52 = vadd.f32 1e-05, %v116_v49  ;;  %v123_v53 = vadd.f32 1e-05, %v115_v50 }
 0x116   :  { %v129_v54 = vsub.f32 1.5, %v128_v51 }
 0x117   :  { %220 = vrsqrt.f32 %v124_v52  ;;  %v219_v55 = vpop.eup %218  ;;  %vm161_vm9 = vweird.f32 %v124_v52  ;;  %vm151_vm11 = vweird.f32 %v123_v53 }
 0x118   :  { %222 = vrsqrt.f32 %v123_v53  ;;  %v130_v56 = vmul.f32 %v217_v39, %v129_v54  ;;  %v136_v57 = vmul.f32 %v219_v55, %v122_v41  ;;  %vm142_vm4 = vweird.f32 %v219_v55 }
 0x119   :  { %vm143_vm6 = vmor %vm141_vm5, %vm142_vm4 }
 0x11a   :  { %v134_v60 = vsel %vm133_vm3, %v217_v39, %v130_v56  ;;  %v137_v61 = vmul.f32 %v219_v55, %v136_v57 }
 0x11b   :  { %v165_v63 = vmul.f32 %v134_v60, %v117_v58 }
 0x11c   :  { %v138_v1 = vmul.f32 0.5, %v137_v61 }
 0x11d   :  { %v221_v0 = vpop.eup %220  ;;  %v173_v3 = vmul.f32 %v214_v59, %v165_v63 }
 0x11e   :  { %v223_v2 = vpop.eup %222  ;;  %v156_v4 = vmul.f32 %v221_v0, %v124_v52  ;;  %v139_v5 = vsub.f32 1.5, %v138_v1  ;;  %vm162_vm7 = vweird.f32 %v221_v0 }
 0x11f   :  { %v146_v6 = vmul.f32 %v223_v2, %v123_v53  ;;  %v181_v7 = vadd.f32 %v215_v62, %v173_v3  ;;  %vm152_vm8 = vweird.f32 %v223_v2  ;;  %vm163_vm10 = vmor %vm161_vm9, %vm162_vm7 }
 0x120   :  { %v157_v8 = vmul.f32 %v221_v0, %v156_v4  ;;  %v140_v9 = vmul.f32 %v219_v55, %v139_v5  ;;  %vm153_vm12 = vmor %vm151_vm11, %vm152_vm8 }
 0x121   :  { %v147_v10 = vmul.f32 %v223_v2, %v146_v6  ;;  %185 = vst [vmem:[%s335_s5] sm:$0xff] %v181_v7 }
 0x122   :  { %v158_v12 = vmul.f32 0.5, %v157_v8  ;;  %v144_v14 = vsel %vm143_vm6, %v219_v55, %v140_v9 }
 0x123   :  { %v148_v15 = vmul.f32 0.5, %v147_v10  ;;  %v166_v16 = vmul.f32 %v144_v14, %v118_v11 }
 0x124   :  { %v159_v19 = vsub.f32 1.5, %v158_v12 }
 0x125   :  { %v149_v20 = vsub.f32 1.5, %v148_v15  ;;  %v174_v21 = vmul.f32 %v214_v59, %v166_v16 }
 0x126   :  { %v160_v22 = vmul.f32 %v221_v0, %v159_v19 }
 0x127   :  { %v150_v24 = vmul.f32 %v223_v2, %v149_v20  ;;  %v182_v25 = vadd.f32 %v215_v62, %v174_v21 }
 0x128   :  { %v164_v26 = vsel %vm163_vm10, %v221_v0, %v160_v22 }
 0x129   :  { %v168_v27 = vmul.f32 %v164_v26, %v120_v23  ;;  %v154_v28 = vsel %vm153_vm12, %v223_v2, %v150_v24  ;;  %186 = vst [vmem:[%s335_s5 + $0x8] sm:$0xff] %v182_v25 }
 0x12a   :  { %v167_v29 = vmul.f32 %v154_v28, %v119_v17 }
 0x12b   :  { %v176_v30 = vmul.f32 %v214_v59, %v168_v27 }
 0x12c   :  { %v175_v31 = vmul.f32 %v214_v59, %v167_v29 }
 0x12d   :  { %v184_v32 = vadd.f32 %v215_v62, %v176_v30 }
 0x12e   :  { %v183_v18 = vadd.f32 %v215_v62, %v175_v31 }
 0x12f   :  { %188 = vst [vmem:[%s335_s5 + $0x18] sm:$0xff] %v184_v32 }
 0x130   :  { %187 = vst [vmem:[%s335_s5 + $0x10] sm:$0xff] %v183_v18 }

// kernel: _lambda_.7
= control target key start
LH: loop header
LB: loop body
LE: loop exit
PB: predicated region body
PF: predicated region fallthrough
CT: control target
= control target key end

     0   :  { %s634_s1 = inlined_call_operand.vmem [shape: bf16[512,128], index: 1, kind: input, shape index: {}]   ;;  %s635_s2 = inlined_call_operand.vmem [shape: f32[1,128], index: 2, kind: input, shape index: {}]   ;;  %s636_s0 = inlined_call_operand.vmem [shape: f32[8,512], index: 0, kind: input, shape index: {}]   ;;  %s637_s3 = inlined_call_operand.vmem [shape: f32[8,128], index: 3, kind: output, shape index: {}]  }
   0x1   :  { %v474_v0 = vld [vmem:[%s634_s1 + $0x38] sm:$0xff]  ;;  %v473_v4 = vld [vmem:[%s634_s1 + $0x30] sm:$0xff]  ;;  %v472_v8 = vld [vmem:[%s634_s1 + $0x28] sm:$0xff] }
   0x2   :  { %v482_v1 = vld [vmem:[%s634_s1 + $0x78] sm:$0xff]  ;;  %282 = vmatpush.bf16.msra.mxu0 %v474_v0  ;;  %v481_v5 = vld [vmem:[%s634_s1 + $0x70] sm:$0xff]  ;;  %v480_v9 = vld [vmem:[%s634_s1 + $0x68] sm:$0xff] }
   0x3   :  { %v490_v2 = vld [vmem:[%s634_s1 + $0xb8] sm:$0xff]  ;;  %295 = vmatpush.bf16.msra.mxu1 %v482_v1  ;;  %v489_v6 = vld [vmem:[%s634_s1 + $0xb0] sm:$0xff]  ;;  %v488_v10 = vld [vmem:[%s634_s1 + $0xa8] sm:$0xff] }
   0x4   :  { %v498_v3 = vld [vmem:[%s634_s1 + $0xf8] sm:$0xff]  ;;  %308 = vmatpush.bf16.msra.mxu2 %v490_v2  ;;  %v497_v7 = vld [vmem:[%s634_s1 + $0xf0] sm:$0xff]  ;;  %v496_v11 = vld [vmem:[%s634_s1 + $0xe8] sm:$0xff] }
   0x5   :  { %321 = vmatpush.bf16.msra.mxu3 %v498_v3  ;;  %v471_v12 = vld [vmem:[%s634_s1 + $0x20] sm:$0xff]  ;;  %v470_v16 = vld [vmem:[%s634_s1 + $0x18] sm:$0xff]  ;;  %v469_v20 = vld [vmem:[%s634_s1 + $0x10] sm:$0xff] }
   0x6   :  { %283 = vmatpush.bf16.msra.mxu0 %v473_v4  ;;  %v479_v13 = vld [vmem:[%s634_s1 + $0x60] sm:$0xff]  ;;  %v478_v17 = vld [vmem:[%s634_s1 + $0x58] sm:$0xff]  ;;  %v477_v21 = vld [vmem:[%s634_s1 + $0x50] sm:$0xff] }
   0x7   :  { %296 = vmatpush.bf16.msra.mxu1 %v481_v5  ;;  %v487_v14 = vld [vmem:[%s634_s1 + $0xa0] sm:$0xff]  ;;  %v486_v18 = vld [vmem:[%s634_s1 + $0x98] sm:$0xff]  ;;  %v485_v22 = vld [vmem:[%s634_s1 + $0x90] sm:$0xff] }
   0x8   :  { %309 = vmatpush.bf16.msra.mxu2 %v489_v6  ;;  %v495_v15 = vld [vmem:[%s634_s1 + $0xe0] sm:$0xff]  ;;  %v494_v19 = vld [vmem:[%s634_s1 + $0xd8] sm:$0xff]  ;;  %v493_v23 = vld [vmem:[%s634_s1 + $0xd0] sm:$0xff] }
   0x9   :  { %322 = vmatpush.bf16.msra.mxu3 %v497_v7  ;;  %v468_v24 = vld [vmem:[%s634_s1 + $0x8] sm:$0xff]  ;;  %v467_v28 = vld [vmem:[%s634_s1] sm:$0xff]  ;;  %v16_v34 = vld [vmem:[%s636_s0 + $0x10] sm:$0xff] }
   0xa   :  { %284 = vmatpush.bf16.msra.mxu0 %v472_v8  ;;  %v476_v25 = vld [vmem:[%s634_s1 + $0x48] sm:$0xff]  ;;  %v475_v29 = vld [vmem:[%s634_s1 + $0x40] sm:$0xff]  ;;  %v17_v35 = vld [vmem:[%s636_s0 + $0x18] sm:$0xff]  ;;  %v20_v38 = vpack.c.bf16 %v16_v34, %v16_v34 }
   0xb   :  { %297 = vmatpush.bf16.msra.mxu1 %v480_v9  ;;  %v484_v26 = vld [vmem:[%s634_s1 + $0x88] sm:$0xff]  ;;  %v483_v30 = vld [vmem:[%s634_s1 + $0x80] sm:$0xff]  ;;  %v21_v39 = vpack.c.bf16 %v17_v35, %v17_v35 }
   0xc   :  { %310 = vmatpush.bf16.msra.mxu2 %v488_v10  ;;  %v492_v27 = vld [vmem:[%s634_s1 + $0xc8] sm:$0xff]  ;;  %v14_v31 = vld [vmem:[%s636_s0] sm:$0xff] }
   0xd   :  { %323 = vmatpush.bf16.msra.mxu3 %v496_v11  ;;  %v15_v32 = vld [vmem:[%s636_s0 + $0x8] sm:$0xff]  ;;  %v491_v33 = vld [vmem:[%s634_s1 + $0xc0] sm:$0xff]  ;;  %v18_v36 = vpack.c.bf16 %v14_v31, %v14_v31 }
   0xe   :  { %285 = vmatpush.bf16.msra.mxu0 %v471_v12  ;;  %v19_v37 = vpack.c.bf16 %v15_v32, %v15_v32  ;;  %v499_v40 = vld [vmem:[%s635_s2] ss:$0 sm:$0xff] }
   0xf   :  { %298 = vmatpush.bf16.msra.mxu1 %v479_v13 }
  0x10   :  { %311 = vmatpush.bf16.msra.mxu2 %v487_v14 }
  0x11   :  { %324 = vmatpush.bf16.msra.mxu3 %v495_v15 }
  0x12   :  { %286 = vmatpush.bf16.msra.mxu0 %v470_v16 }
  0x13   :  { %299 = vmatpush.bf16.msra.mxu1 %v478_v17 }
  0x14   :  { %312 = vmatpush.bf16.msra.mxu2 %v486_v18 }
  0x15   :  { %325 = vmatpush.bf16.msra.mxu3 %v494_v19 }
  0x16   :  { %287 = vmatpush.bf16.msra.mxu0 %v469_v20 }
  0x17   :  { %300 = vmatpush.bf16.msra.mxu1 %v477_v21 }
  0x18   :  { %313 = vmatpush.bf16.msra.mxu2 %v485_v22 }
  0x19   :  { %326 = vmatpush.bf16.msra.mxu3 %v493_v23 }
  0x1a   :  { %288 = vmatpush.bf16.msra.mxu0 %v468_v24 }
  0x1b   :  { %301 = vmatpush.bf16.msra.mxu1 %v476_v25 }
  0x1c   :  { %314 = vmatpush.bf16.msra.mxu2 %v484_v26 }
  0x1d   :  { %327 = vmatpush.bf16.msra.mxu3 %v492_v27 }
  0x1e   :  { %289 = vmatpush.bf16.msra.mxu0 %v467_v28 }
  0x1f   :  { %302 = vmatpush.bf16.msra.mxu1 %v475_v29 }
  0x20   :  { %315 = vmatpush.bf16.msra.mxu2 %v483_v30 }
  0x21   :  { %328 = vmatpush.bf16.msra.mxu3 %v491_v33  ;;  %290 = vmatmul.bf16.vlgmr.msra.gmra.mxu0 %v18_v36 }
  0x22   :  { %303 = vmatmul.bf16.vlgmr.msra.gmra.mxu1 %v19_v37 }
  0x23   :  { %316 = vmatmul.bf16.vlgmr.msra.gmra.mxu2 %v20_v38 }
  0x24   :  { %329 = vmatmul.bf16.vlgmr.msra.gmra.mxu3 %v21_v39 }
  0x9e   :  { %v291_v41 = vpop.f32.mrf.mxu0 }
  0x9f   :  { %v304_v42 = vpop.f32.mrf.mxu1  ;;  %v292_v43 = vadd.f32 %v499_v40, %v291_v41 }
  0xa1   :  { %v305_v44 = vadd.f32 %v304_v42, %v292_v43 }
  0xa6   :  { %v317_v45 = vpop.f32.mrf.mxu2  ;;  %v293_v48 = vpop.f32.mrf.mxu0 }
  0xa7   :  { %v330_v46 = vpop.f32.mrf.mxu3  ;;  %v318_v47 = vadd.f32 %v317_v45, %v305_v44  ;;  %v306_v49 = vpop.f32.mrf.mxu1 }
  0xa9   :  { %v331_v50 = vadd.f32 %v330_v46, %v318_v47 }
  0xab   :  { %334 = vst [vmem:[%s637_s3] sm:$0xff] %v331_v50 }
  0xae   :  { %v319_v51 = vpop.f32.mrf.mxu2 }
  0xaf   :  { %v332_v52 = vpop.f32.mrf.mxu3 }

// kernel: _lambda_.6
= control target key start
LH: loop header
LB: loop body
LE: loop exit
PB: predicated region body
PF: predicated region fallthrough
CT: control target
= control target key end

     0   :  { %s1183_s30 = smov 0   ;;  %s1484_s0 = inlined_call_operand.vmem [shape: f32[2,16,128], index: 0, kind: input, shape index: {}]   ;;  %s1485_s1 = inlined_call_operand.vmem [shape: f32[9,128], index: 1, kind: input, shape index: {}]   ;;  %s1486_s2 = inlined_call_operand.vmem [shape: f32[1,128], index: 2, kind: input, shape index: {}]   ;;  %s1487_s3 = inlined_call_operand.vmem [shape: f32[1,128], index: 3, kind: input, shape index: {}]   ;;  %s1488_s4 = inlined_call_operand.vmem [shape: f32[1,128], index: 4, kind: input, shape index: {}]   ;;  %s1489_s5 = inlined_call_operand.vmem [shape: bf16[128,256], index: 5, kind: input, shape index: {}]   ;;  %s1490_s6 = inlined_call_operand.vmem [shape: f32[1,256], index: 6, kind: input, shape index: {}]   ;;  %s1491_s7 = inlined_call_operand.vmem [shape: bf16[128,128], index: 7, kind: input, shape index: {}]   ;;  %s1492_s8 = inlined_call_operand.vmem [shape: f32[1,128], index: 8, kind: input, shape index: {}]   ;;  %s1493_s9 = inlined_call_operand.vmem [shape: f32[2,16,128], index: 9, kind: output, shape index: {}]  }
   0x1 LB: > { %s955_s10 = sadd.s32 4294967295, %s1131_s30   ;;  %p959_p0 = scmp.ge.s32.totalorder %s1131_s30, 1  ;;  %s1131_s30 = sphi %s1183_s30, %s19_s30  }
   0x2   : > { %p287_p1 = scmp.lt.s32.totalorder %s1131_s30, 3 }
   0x4   : > { %p288_p2 = pnand %p959_p0, %p287_p1 }
   0x5   : > { %p323_p3 = scmp.lt.s32.totalorder (!%p288_p2), %s955_s10, 1 }
   0x6   : > { %291 = sbr.rel (%p288_p2) target bundleno = 523 (0x20b), region = 56 }
   0xb   : > { %v335_v0 = vlaneseq  ;;  %v1194_v1 = vld [vmem:[%s1485_s1] sm:$0xff]  ;;  %s1503_s10 = smov (!%p323_p3, %s955_s10), 1  ;;  %vm374_vm0 = vcmask 1044480   ;;  %vm427_vm1 = vcmask 1046528   ;;  %vm395_vm3 = vcmask 1043456  }
   0xc   : > { %v383_v3 = vperm.slane %v1194_v1, 0  ;;  %v1200_v4 = vperm.slane %v1194_v1, 3  ;;  %s1066_s13 = sshll.u32 %s1503_s10, 4  ;;  %v405_v7 = vperm.slane %v1194_v1, 6  ;;  %v1205_v8 = vperm.slane %v1194_v1, 1 }
   0xd   : > { %v336_v2 = vshrl.u32 %v335_v0, 7  ;;  %s327_s16 = scalar_lea.vmem %s1484_s0, %s1066_s13  ;;  %v1213_v9 = vperm.slane %v1194_v1, 4  ;;  %v454_v10 = vperm.slane %v1194_v1, 7  ;;  %vm444_vm4 = vcmask 1042432   ;;  %v1100_v54 = vld [vmem:[%s1485_s1 + $0x8] ss:$0 sm:$0xff]  ;;  %s332_s21 = scalar_lea.vmem %s1493_s9, %s1066_s13 }
   0xe   : > { %v1216_v11 = vld [vmem:[%s327_s16] sm:$0xff]  ;;  %v1218_v12 = vld [vmem:[%s327_s16 + $0x8] sm:$0xff]  ;;  %v1221_v14 = vperm.slane %v1194_v1, 2  ;;  %v1232_v21 = vperm.slane %v1194_v1, 5  ;;  %vm495_vm8 = vcmask 1045504   ;;  %vm512_vm9 = vcmask 1041408  }
   0xf   : > { %v337_v5 = vadd.s32 8, %v336_v2  ;;  %v342_v6 = vand.u32 3, %v336_v2  ;;  %v412_v16 = vrot.slane %v1216_v11, 3  ;;  %v413_v17 = vrot.slane %v1218_v12, 3 }
  0x10   : > { %v457_v41 = vmul.f32 0.0, %v454_v10 }
  0x11   : > { %v349_v13 = vand.u32 3, %v337_v5  ;;  %vm364_vm2 = vcmp.lt.s32.totalorder %v342_v6, 3  ;;  %vm470_vm5 = vcmp.ge.s32.totalorder %v342_v6, 1  ;;  %v414_v23 = vsel %vm374_vm0, %v412_v16, %v413_v17 }
  0x12   : > { %v370_v15 = vsel %vm364_vm2, %v1216_v11, 0.0  ;;  %v476_v18 = vsel %vm470_vm5, %v1216_v11, 0.0  ;;  %v418_v24 = vsel %vm374_vm0, 0.0, %v412_v16  ;;  %v1240_v29 = vmul.f32 %v1205_v8, %v414_v23 }
  0x13   : > { %vm365_vm6 = vcmp.lt.s32.totalorder %v349_v13, 3  ;;  %v375_v19 = vrot.slane %v370_v15, 3  ;;  %vm1227_vm7 = vcmp.ge.s32.totalorder %v349_v13, 1  ;;  %v480_v25 = vrot.slane %v476_v18, 3 }
  0x14   : > { %v371_v22 = vsel %vm365_vm6, %v1218_v12, 0.0  ;;  %v421_v28 = vmul.f32 %v1205_v8, %v418_v24  ;;  %v419_v31 = vsel %vm374_vm0, %v413_v17, 0.0  ;;  %v438_v32 = vmul.f32 %v1213_v9, %v418_v24 }
  0x15   : > { %v376_v26 = vrot.slane %v371_v22, 3  ;;  %v381_v27 = vsel %vm374_vm0, 0.0, %v375_v19  ;;  %v1246_v33 = vmul.f32 %v1213_v9, %v414_v23  ;;  %v429_v36 = vrot.slane %v1240_v29, 1 }
  0x16   : > { %v389_v30 = vmul.f32 %v1200_v4, %v381_v27  ;;  %v428_v35 = vrot.slane %v421_v28, 1  ;;  %v455_v37 = vmul.f32 %v454_v10, %v414_v23  ;;  %v445_v40 = vrot.slane %v438_v32, 5 }
  0x17   : > { %v377_v34 = vsel %vm374_vm0, %v375_v19, %v376_v26  ;;  %v384_v42 = vmul.f32 %v383_v3, %v381_v27  ;;  %v446_v44 = vrot.slane %v1246_v33, 5  ;;  %v456_v45 = vmul.f32 %v454_v10, %v419_v31 }
  0x18   : > { %v390_v38 = vmul.f32 %v1200_v4, %v377_v34  ;;  %v396_v39 = vrot.slane %v389_v30, 4  ;;  %v406_v43 = vmul.f32 %v405_v7, %v377_v34  ;;  %v477_v47 = vsel %vm1227_vm7, %v1218_v12, 0.0 }
  0x19   : > { %v486_v48 = vsel %vm374_vm0, 0.0, %v480_v25  ;;  %v382_v49 = vsel %vm374_vm0, %v376_v26, 0.0  ;;  %v430_v50 = vsel %vm427_vm1, %v428_v35, %v429_v36  ;;  %v461_v51 = vrot.slane %v455_v37, 1 }
  0x1a   : > { %v397_v46 = vrot.slane %v390_v38, 4  ;;  %v481_v52 = vrot.slane %v477_v47, 3  ;;  %v489_v53 = vmul.f32 %v1221_v14, %v486_v48  ;;  %v447_v56 = vsel %vm444_vm4, %v445_v40, %v446_v44 }
  0x1b   : > { %v462_v57 = vrot.slane %v456_v45, 1  ;;  %v391_v58 = vmul.f32 %v1200_v4, %v382_v49  ;;  %v506_v62 = vmul.f32 %v1232_v21, %v486_v48  ;;  %v385_v5 = vmul.f32 %v383_v3, %v377_v34 }
  0x1c   : > { %v398_v55 = vsel %vm395_vm3, %v396_v39, %v397_v46  ;;  %v482_v60 = vsel %vm374_vm0, %v480_v25, %v481_v52  ;;  %v487_v61 = vsel %vm374_vm0, %v481_v52, 0.0  ;;  %v496_v0 = vrot.slane %v489_v53, 2 }
  0x1d   : > { %v403_v59 = vadd.f32 %v398_v55, %v384_v42  ;;  %v490_v63 = vmul.f32 %v1221_v14, %v482_v60  ;;  %v507_v2 = vmul.f32 %v1232_v21, %v482_v60  ;;  %v523_v10 = vmul.f32 %v1100_v54, %v482_v60  ;;  %v1024_v60 = vld [vmem:[%s1489_s5 + $0x78] sm:$0xf0] }
  0x1e   : > { %v524_v13 = vmul.f32 %v1100_v54, %v487_v61  ;;  %v399_v15 = vrot.slane %v391_v58, 4  ;;  %v463_v4 = vsel %vm427_vm1, %v461_v51, %v462_v57  ;;  %v407_v17 = vmul.f32 %v405_v7, %v382_v49  ;;  %v1082_v58 = vld [vmem:[%s1489_s5 + $0x74] sm:$0xf] }
  0x1f   : > { %v408_v6 = vadd.f32 %v406_v43, %v403_v59  ;;  %v497_v16 = vrot.slane %v490_v63, 2  ;;  %v423_v18 = vmul.f32 %v1205_v8, %v419_v31  ;;  %v513_v20 = vrot.slane %v506_v62, 6  ;;  %v1014_v62 = vld [vmem:[%s1489_s5 + $0x60] sm:$0xf]  ;;  %v1081_v63 = vld [vmem:[%s1489_s5 + $0x64] sm:$0xf0] }
  0x20   : > { %v514_v22 = vrot.slane %v507_v2, 6  ;;  %v400_v23 = vsel %vm395_vm3, %v397_v46, %v399_v15  ;;  %v529_v24 = vrot.slane %v523_v10, 2  ;;  %v530_v25 = vrot.slane %v524_v13, 2  ;;  %v1006_v10 = vld [vmem:[%s1489_s5 + $0x50] sm:$0xf] }
  0x21   : > { %v435_v19 = vadd.f32 %v430_v50, %v408_v6  ;;  %v404_v3 = vadd.f32 %v400_v23, %v385_v5  ;;  %v431_v26 = vrot.slane %v423_v18, 1  ;;  %v498_v28 = vsel %vm495_vm8, %v496_v0, %v497_v16  ;;  %v1080_v0 = vld [vmem:[%s1489_s5 + $0x64] sm:$0xf]  ;;  %v1016_v5 = vld [vmem:[%s1489_s5 + $0x68] sm:$0xf0] }
  0x22   : > { %v440_v29 = vmul.f32 %v1213_v9, %v419_v31  ;;  %v464_v30 = vrot.slane %v457_v41, 1  ;;  %v491_v7 = vmul.f32 %v1221_v14, %v487_v61  ;;  %v508_v8 = vmul.f32 %v1232_v21, %v487_v61  ;;  %v1101_v14 = vld [vmem:[%s1486_s2] ss:$0 sm:$0xff]  ;;  %v1079_v13 = vld [vmem:[%s1489_s5 + $0x54] sm:$0xf0] }
  0x23   : > { %v452_v27 = vadd.f32 %v447_v56, %v435_v19  ;;  %v409_v32 = vadd.f32 %v407_v17, %v404_v3  ;;  %v432_v1 = vsel %vm427_vm1, %v429_v36, %v431_v26  ;;  %v525_v35 = vmul.f32 0.0, %v1100_v54  ;;  %v1022_v56 = vld [vmem:[%s1489_s5 + $0x70] sm:$0xf]  ;;  %v1078_v15 = vld [vmem:[%s1489_s5 + $0x54] sm:$0xf] }
  0x24   : > { %v448_v34 = vrot.slane %v440_v29, 5  ;;  %v515_v37 = vsel %vm512_vm9, %v513_v20, %v514_v22  ;;  %v499_v39 = vrot.slane %v491_v7, 2  ;;  %v465_v9 = vsel %vm427_vm1, %v462_v57, %v464_v30  ;;  %v1083_v57 = vld [vmem:[%s1489_s5 + $0x74] sm:$0xf0]  ;;  %v998_v18 = vld [vmem:[%s1489_s5 + $0x40] sm:$0xf] }
  0x25   : > { %v468_v33 = vadd.f32 %v463_v4, %v452_v27  ;;  %v436_v38 = vadd.f32 %v432_v1, %v409_v32  ;;  %v516_v31 = vrot.slane %v508_v8, 6  ;;  %v531_v41 = vsel %vm495_vm8, %v529_v24, %v530_v25  ;;  %v1077_v19 = vld [vmem:[%s1489_s5 + $0x44] sm:$0xf0]  ;;  %v1076_v20 = vld [vmem:[%s1489_s5 + $0x44] sm:$0xf] }
  0x26   : > { %v449_v42 = vsel %vm444_vm4, %v446_v44, %v448_v34  ;;  %v500_v21 = vsel %vm495_vm8, %v497_v16, %v499_v39  ;;  %v532_v45 = vrot.slane %v525_v35, 2  ;;  %v1023_v59 = vor.u32 %v1083_v57, %v1022_v56  ;;  %v1008_v16 = vld [vmem:[%s1489_s5 + $0x58] sm:$0xf0]  ;;  %v1000_v23 = vld [vmem:[%s1489_s5 + $0x48] sm:$0xf0] }
  0x27   : > { %v503_v40 = vadd.f32 %v498_v28, %v468_v33  ;;  %v453_v36 = vadd.f32 %v449_v42, %v436_v38  ;;  %v517_v48 = vsel %vm512_vm9, %v514_v22, %v516_v31  ;;  %v1027_v61 = vor.u32 %v1082_v58, %v1024_v60  ;;  %v1075_v3 = vld [vmem:[%s1489_s5 + $0x34] sm:$0xf0]  ;;  %v1074_v26 = vld [vmem:[%s1489_s5 + $0x34] sm:$0xf]  ;;  %v992_v28 = vld [vmem:[%s1489_s5 + $0x38] sm:$0xf0] }
  0x28   : > { %v533_v50 = vsel %vm495_vm8, %v530_v25, %v532_v45  ;;  %703 = vmatpush.bf16.msra.mxu0 %v1023_v59  ;;  %v1015_v2 = vor.u32 %v1081_v63, %v1014_v62  ;;  %v1019_v6 = vor.u32 %v1080_v0, %v1016_v5  ;;  %v1007_v4 = vor.u32 %v1079_v13, %v1006_v10  ;;  %v990_v25 = vld [vmem:[%s1489_s5 + $0x30] sm:$0xf]  ;;  %v982_v30 = vld [vmem:[%s1489_s5 + $0x20] sm:$0xf]  ;;  %v1073_v32 = vld [vmem:[%s1489_s5 + $0x24] sm:$0xf0] }
  0x29   : > { %v520_v43 = vadd.f32 %v515_v37, %v503_v40  ;;  %v469_v46 = vadd.f32 %v465_v9, %v453_v36  ;;  %717 = vmatpush.bf16.msra.mxu1 %v1027_v61  ;;  %v1011_v17 = vor.u32 %v1078_v15, %v1008_v16  ;;  %v999_v22 = vor.u32 %v1077_v19, %v998_v18  ;;  %v1072_v1 = vld [vmem:[%s1489_s5 + $0x24] sm:$0xf]  ;;  %v984_v8 = vld [vmem:[%s1489_s5 + $0x28] sm:$0xf0]  ;;  %v974_v35 = vld [vmem:[%s1489_s5 + $0x10] sm:$0xf] }
  0x2a   : > { %v1003_v24 = vor.u32 %v1076_v20, %v1000_v23  ;;  %v991_v27 = vor.u32 %v1075_v3, %v990_v25  ;;  %v995_v29 = vor.u32 %v1074_v26, %v992_v28  ;;  %v983_v7 = vor.u32 %v1073_v32, %v982_v30  ;;  %v1071_v37 = vld [vmem:[%s1489_s5 + $0x14] sm:$0xf0]  ;;  %v1070_v38 = vld [vmem:[%s1489_s5 + $0x14] sm:$0xf]  ;;  %v976_v42 = vld [vmem:[%s1489_s5 + $0x18] sm:$0xf0] }
  0x2b   : > { %v536_v47 = vadd.f32 %v531_v41, %v520_v43  ;;  %v504_v49 = vadd.f32 %v500_v21, %v469_v46  ;;  %v987_v33 = vor.u32 %v1072_v1, %v984_v8  ;;  %v975_v40 = vor.u32 %v1071_v37, %v974_v35  ;;  %v966_v9 = vld [vmem:[%s1489_s5] sm:$0xf]  ;;  %v1069_v36 = vld [vmem:[%s1489_s5 + $0x4] sm:$0xf0]  ;;  %v1068_v43 = vld [vmem:[%s1489_s5 + $0x4] sm:$0xf] }
  0x2c   : > { %704 = vmatpush.bf16.msra.mxu0 %v1015_v2  ;;  %v979_v41 = vor.u32 %v1070_v38, %v976_v42  ;;  %v967_v46 = vor.u32 %v1069_v36, %v966_v9  ;;  %v1102_v16 = vld [vmem:[%s1487_s3] ss:$0 sm:$0xff]  ;;  %v1091_v26 = vld [vmem:[%s1491_s7 + $0x38] sm:$0xff]  ;;  %v1086_v38 = vld [vmem:[%s1491_s7 + $0x10] sm:$0xff] }
  0x2d   : > { %v1295_v44 = vadd.f32 %v1101_v14, %v536_v47  ;;  %v521_v51 = vadd.f32 %v517_v48, %v504_v49  ;;  %718 = vmatpush.bf16.msra.mxu1 %v1019_v6  ;;  %v1103_v23 = vld [vmem:[%s1488_s4] ss:$0 sm:$0xff]  ;;  %882 = vmatpush.bf16.msra.mxu2 %v1091_v26  ;;  %v1087_v8 = vld [vmem:[%s1491_s7 + $0x18] sm:$0xff]  ;;  %v1085_v42 = vld [vmem:[%s1491_s7 + $0x8] sm:$0xff] }
  0x2e   : > { %v617_v28 = vld [vmem:[%s1490_s6] sm:$0x3] }
  0x2f   : > { %544 = vadd.xlane.f32.xlu0 %v1295_v44  ;;  %v550_v52 = vmul.f32 %v1295_v44, %v1295_v44  ;;  %v537_v53 = vadd.f32 %v533_v50, %v521_v51  ;;  %v619_v30 = vperm.slane %v617_v28, 0  ;;  %v620_v32 = vperm.slane %v617_v28, 1 }
  0x30   : > { %705 = vmatpush.bf16.msra.mxu0 %v1007_v4 }
  0x31   : > { %552 = vadd.xlane.f32.xlu1 %v550_v52  ;;  %v1301_v54 = vadd.f32 %v1101_v14, %v537_v53  ;;  %719 = vmatpush.bf16.msra.mxu1 %v1011_v17  ;;  %v968_v14 = vld [vmem:[%s1489_s5 + $0x8] sm:$0xf0] }
  0x32   : > { %v971_v48 = vor.u32 %v1068_v43, %v968_v14 }
  0x33   : > { %v551_v55 = vmul.f32 %v1301_v54, %v1301_v54 }
  0x34   : > { %706 = vmatpush.bf16.msra.mxu0 %v999_v22 }
  0x35   : > { %720 = vmatpush.bf16.msra.mxu1 %v1003_v24 }
  0x37   : > { %546 = vadd.xlane.f32.xlu0 %v1301_v54 }
  0x38   : > { %707 = vmatpush.bf16.msra.mxu0 %v991_v27  ;;  %v1089_v27 = vld [vmem:[%s1491_s7 + $0x28] sm:$0xff] }
  0x39   : > { %554 = vadd.xlane.f32.xlu1 %v551_v55  ;;  %721 = vmatpush.bf16.msra.mxu1 %v995_v29  ;;  %v1088_v29 = vld [vmem:[%s1491_s7 + $0x20] sm:$0xff] }
  0x3c   : > { %708 = vmatpush.bf16.msra.mxu0 %v983_v7 }
  0x3d   : > { %722 = vmatpush.bf16.msra.mxu1 %v987_v33 }
  0x40   : > { %709 = vmatpush.bf16.msra.mxu0 %v975_v40 }
  0x41   : > { %723 = vmatpush.bf16.msra.mxu1 %v979_v41  ;;  %v1084_v41 = vld [vmem:[%s1491_s7] sm:$0xff] }
  0x44   : > { %710 = vmatpush.bf16.msra.mxu0 %v967_v46 }
  0x45   : > { %724 = vmatpush.bf16.msra.mxu1 %v971_v48 }
  0xa2   : > { %v545_v34 = vpop.xlane.xlu0 %544 }
  0xa3   : > { %v548_v39 = vmul.f32 0.03125, %v545_v34 }
  0xa4   : > { %v553_v31 = vpop.xlane.xlu1 %552 }
  0xa5   : > { %v558_v21 = vmul.f32 %v548_v39, %v548_v39  ;;  %v556_v45 = vmul.f32 0.03125, %v553_v31  ;;  %v562_v13 = vsub.f32 %v1295_v44, %v548_v39 }
  0xa7   : > { %v560_v47 = vsub.f32 %v556_v45, %v558_v21 }
  0xa9   : > { %v564_v49 = vadd.f32 1e-05, %v560_v47 }
  0xaa   : > { %v547_v50 = vpop.xlane.xlu0 %546 }
  0xab   : > { %1105 = vrsqrt.f32 %v564_v49  ;;  %v549_v51 = vmul.f32 0.03125, %v547_v50  ;;  %vm572_vm11 = vweird.f32 %v564_v49 }
  0xac   : > { %v555_v52 = vpop.xlane.xlu1 %554 }
  0xad   : > { %v559_v53 = vmul.f32 %v549_v51, %v549_v51  ;;  %v557_v55 = vmul.f32 0.03125, %v555_v52  ;;  %v563_v18 = vsub.f32 %v1301_v54, %v549_v51  ;;  %v1090_v54 = vld [vmem:[%s1491_s7 + $0x30] sm:$0xff] }
  0xae   : > { %883 = vmatpush.bf16.msra.mxu2 %v1090_v54 }
  0xaf   : > { %v561_v56 = vsub.f32 %v557_v55, %v559_v53 }
  0xb1   : > { %v1106_v57 = vpop.eup %1105  ;;  %v565_v58 = vadd.f32 1e-05, %v561_v56 }
  0xb2   : > { %v567_v59 = vmul.f32 %v1106_v57, %v564_v49  ;;  %vm573_vm10 = vweird.f32 %v1106_v57  ;;  %884 = vmatpush.bf16.msra.mxu2 %v1089_v27 }
  0xb3   : > { %1107 = vrsqrt.f32 %v565_v58  ;;  %vm574_vm12 = vmor %vm572_vm11, %vm573_vm10  ;;  %vm582_vm14 = vweird.f32 %v565_v58 }
  0xb4   : > { %v568_v60 = vmul.f32 %v1106_v57, %v567_v59 }
  0xb6   : > { %v569_v61 = vmul.f32 0.5, %v568_v60  ;;  %885 = vmatpush.bf16.msra.mxu2 %v1088_v29 }
  0xb8   : > { %v570_v62 = vsub.f32 1.5, %v569_v61 }
  0xb9   : > { %v1108_v63 = vpop.eup %1107 }
  0xba   : > { %v571_v0 = vmul.f32 %v1106_v57, %v570_v62  ;;  %v577_v2 = vmul.f32 %v1108_v63, %v565_v58  ;;  %vm583_vm13 = vweird.f32 %v1108_v63  ;;  %886 = vmatpush.bf16.msra.mxu2 %v1087_v8 }
  0xbb   : > { %vm584_vm15 = vmor %vm582_vm14, %vm583_vm13 }
  0xbc   : > { %v578_v5 = vmul.f32 %v1108_v63, %v577_v2  ;;  %v575_v10 = vsel %vm574_vm12, %v1106_v57, %v571_v0 }
  0xbd   : > { %v586_v4 = vmul.f32 %v575_v10, %v562_v13 }
  0xbe   : > { %v579_v6 = vmul.f32 0.5, %v578_v5  ;;  %887 = vmatpush.bf16.msra.mxu2 %v1086_v38 }
  0xbf   : > { %v592_v22 = vmul.f32 %v1102_v16, %v586_v4 }
  0xc0   : > { %v580_v15 = vsub.f32 1.5, %v579_v6 }
  0xc1   : > { %v598_v24 = vadd.f32 %v1103_v23, %v592_v22 }
  0xc2   : > { %v581_v17 = vmul.f32 %v1108_v63, %v580_v15  ;;  %888 = vmatpush.bf16.msra.mxu2 %v1085_v42 }
  0xc4   : > { %v585_v19 = vsel %vm584_vm15, %v1108_v63, %v581_v17 }
  0xc5   : > { %v587_v20 = vmul.f32 %v585_v19, %v563_v18 }
  0xc6   : > { %889 = vmatpush.bf16.msra.mxu2 %v1084_v41 }
  0xc7   : > { %v593_v44 = vmul.f32 %v1102_v16, %v587_v20 }
  0xc9   : > { %v599_v25 = vadd.f32 %v1103_v23, %v593_v44 }
  0xcb   : > { %v600_v3 = vpack.c.bf16 %v599_v25, %v598_v24 }
  0xcd   : > { %711 = vmatmul.bf16.vlgmr.msra.gmra.mxu0 %v600_v3  ;;  %725 = vmatmul.bf16.vlgmr.msra.gmra.mxu1 %v600_v3 }
 0x14a   : > { %v712_v1 = vpop.f32.mrf.mxu0  ;;  %v726_v7 = vpop.f32.mrf.mxu1 }
 0x14b   : > { %v1428_v33 = vadd.f32 %v712_v1, %v619_v30  ;;  %v1430_v34 = vadd.f32 %v726_v7, %v620_v32 }
 0x14d   : > { %v1028_v35 = vmul.f32 -1.442695, %v1428_v33  ;;  %v1030_v37 = vmul.f32 -1.442695, %v1430_v34 }
 0x14f   : > { %1109 = vpow2.f32 %v1028_v35 }
 0x150   : > { %1111 = vpow2.f32 %v1030_v37 }
 0x152   : > { %v714_v39 = vpop.f32.mrf.mxu0  ;;  %v728_v40 = vpop.f32.mrf.mxu1 }
 0x153   : > { %v1440_v9 = vadd.f32 %v714_v39, %v619_v30  ;;  %v1442_v31 = vadd.f32 %v728_v40, %v620_v32 }
 0x155   : > { %v1110_v36 = vpop.eup %1109  ;;  %v1029_v43 = vmul.f32 -1.442695, %v1440_v9  ;;  %v1031_v45 = vmul.f32 -1.442695, %v1442_v31 }
 0x156   : > { %v1112_v14 = vpop.eup %1111  ;;  %v737_v21 = vadd.f32 1.0, %v1110_v36 }
 0x157   : > { %v777_v46 = vadd.f32 1.0, %v1112_v14  ;;  %1113 = vpow2.f32 %v1029_v43  ;;  %v1104_v14 = vld [vmem:[%s1492_s8] ss:$0 sm:$0xff] }
 0x158   : > { %1115 = vrcp.f32 %v737_v21  ;;  %v748_v61 = vand.u32 2147483647, %v737_v21  ;;  %v750_v62 = vand.u32 2147483648, %v737_v21  ;;  %vm744_vm2 = vweird.f32 %v737_v21 }
 0x159   : > { %1117 = vrcp.f32 %v777_v46  ;;  %v790_v5 = vand.u32 2147483648, %v777_v46  ;;  %vm784_vm3 = vweird.f32 %v777_v46  ;;  %v788_v4 = vand.u32 2147483647, %v777_v46 }
 0x15a   : > { %1119 = vpow2.f32 %v1031_v45  ;;  %vm1453_vm5 = vcmp.eq.f32.partialorder %v748_v61, 8.507059e+37  ;;  %v751_v18 = vor.u32 1.1754944e-38, %v750_v62 }
 0x15b   : > { %v791_v24 = vor.u32 1.1754944e-38, %v790_v5  ;;  %vm789_vm9 = vcmp.eq.f32.partialorder %v788_v4, 8.507059e+37 }
 0x15d   : > { %v1114_v47 = vpop.eup %1113 }
 0x15e   : > { %v1116_v48 = vpop.eup %1115  ;;  %v738_v49 = vadd.f32 1.0, %v1114_v47 }
 0x15f   : > { %v1118_v50 = vpop.eup %1117  ;;  %v740_v51 = vmul.f32 %v1116_v48, %v737_v21  ;;  %vm745_vm0 = vweird.f32 %v1116_v48 }
 0x160   : > { %v1120_v52 = vpop.eup %1119  ;;  %v780_v53 = vmul.f32 %v1118_v50, %v777_v46  ;;  %1121 = vrcp.f32 %v738_v49  ;;  %vm785_vm1 = vweird.f32 %v1118_v50  ;;  %vm1449_vm4 = vmor %vm744_vm2, %vm745_vm0  ;;  %v765_v16 = vand.u32 2147483648, %v738_v49 }
 0x161   : > { %v741_v55 = vsub.f32 1.0, %v740_v51  ;;  %v778_v56 = vadd.f32 1.0, %v1120_v52  ;;  %vm1457_vm6 = vmor %vm784_vm3, %vm785_vm1  ;;  %v763_v22 = vand.u32 2147483647, %v738_v49  ;;  %vm759_vm8 = vweird.f32 %v738_v49 }
 0x162   : > { %v781_v57 = vsub.f32 1.0, %v780_v53  ;;  %v766_v27 = vor.u32 1.1754944e-38, %v765_v16 }
 0x163   : > { %1123 = vrcp.f32 %v778_v56  ;;  %v742_v58 = vmul.f32 %v1116_v48, %v741_v55  ;;  %v803_v26 = vand.u32 2147483647, %v778_v56  ;;  %v805_v54 = vand.u32 2147483648, %v778_v56 }
 0x164   : > { %v782_v59 = vmul.f32 %v1118_v50, %v781_v57  ;;  %vm764_vm12 = vcmp.eq.f32.partialorder %v763_v22, 8.507059e+37  ;;  %vm799_vm13 = vweird.f32 %v778_v56 }
 0x165   : > { %v743_v0 = vadd.f32 %v1116_v48, %v742_v58  ;;  %vm804_vm15 = vcmp.eq.f32.partialorder %v803_v26, 8.507059e+37  ;;  %v806_v8 = vor.u32 1.1754944e-38, %v805_v54 }
 0x166   : > { %v1122_v60 = vpop.eup %1121  ;;  %v783_v2 = vadd.f32 %v1118_v50, %v782_v59 }
 0x167   : > { %v755_v63 = vmul.f32 %v1122_v60, %v738_v49  ;;  %vm760_vm7 = vweird.f32 %v1122_v60  ;;  %v747_v23 = vsel %vm1449_vm4, %v1116_v48, %v743_v0 }
 0x168   : > { %v787_v44 = vsel %vm1457_vm6, %v1118_v50, %v783_v2  ;;  %vm761_vm10 = vmor %vm759_vm8, %vm760_vm7  ;;  %v752_v29 = vsel %vm1453_vm5, %v751_v18, %v747_v23 }
 0x169   : > { %v1124_v6 = vpop.eup %1123  ;;  %v756_v10 = vsub.f32 1.0, %v755_v63  ;;  %v792_v30 = vsel %vm789_vm9, %v791_v24, %v787_v44  ;;  %v769_v35 = vmul.f32 %v752_v29, %v1428_v33 }
 0x16a   : > { %v795_v17 = vmul.f32 %v1124_v6, %v778_v56  ;;  %vm800_vm11 = vweird.f32 %v1124_v6  ;;  %v809_v37 = vmul.f32 %v792_v30, %v1430_v34 }
 0x16b   : > { %v757_v20 = vmul.f32 %v1122_v60, %v756_v10  ;;  %vm801_vm14 = vmor %vm799_vm13, %vm800_vm11 }
 0x16c   : > { %v796_v25 = vsub.f32 1.0, %v795_v17  ;;  %v811_v41 = vmul.f32 %v809_v37, %v769_v35 }
 0x16d   : > { %v758_v3 = vadd.f32 %v1122_v60, %v757_v20 }
 0x16e   : > { %v797_v28 = vmul.f32 %v1124_v6, %v796_v25 }
 0x16f   : > { %v762_v32 = vsel %vm761_vm10, %v1122_v60, %v758_v3 }
 0x170   : > { %v767_v1 = vsel %vm764_vm12, %v766_v27, %v762_v32  ;;  %v798_v7 = vadd.f32 %v1124_v6, %v797_v28 }
 0x171   : > { %v770_v38 = vmul.f32 %v767_v1, %v1440_v9 }
 0x172   : > { %v802_v39 = vsel %vm801_vm14, %v1124_v6, %v798_v7 }
 0x173   : > { %v807_v40 = vsel %vm804_vm15, %v806_v8, %v802_v39 }
 0x174   : > { %v810_v42 = vmul.f32 %v807_v40, %v1442_v31 }
 0x176   : > { %v812_v36 = vmul.f32 %v810_v42, %v770_v38 }
 0x178   : > { %v813_v43 = vpack.c.bf16 %v812_v36, %v811_v41 }
 0x17a   : > { %890 = vmatmul.bf16.vlgmr.msra.gmra.mxu2 %v813_v43 }
 0x1fd   : > { %v891_v21 = vpop.f32.mrf.mxu2 }
 0x1fe   : > { %v892_v45 = vadd.f32 %v1104_v14, %v891_v21 }
 0x200   : > { %v896_v33 = vadd.f32 %v892_v45, %v1216_v11 }
 0x202   : > { %898 = vst [vmem:[%s332_s21] sm:$0xff] %v896_v33 }
 0x205   : > { %v893_v34 = vpop.f32.mrf.mxu2 }
 0x206   : > { %v894_v9 = vadd.f32 %v1104_v14, %v893_v34 }
 0x208   : > { %v897_v31 = vadd.f32 %v894_v9, %v1218_v12 }
 0x20a   : > { %899 = vst [vmem:[%s332_s21 + $0x8] sm:$0xff] %v897_v31 }
 0x20b PF: > { %s19_s30 = sadd.s32 1, %s1131_s30  }
 0x20c   : > { %p16_p4 = scmp.ge.s32.totalorder %s19_s30, 4  }
 0x20e   :  { %18 = sbr.rel (!%p16_p4) target bundleno = 1 (0x1), region = 86 }

// kernel: _lambda_.8
= control target key start
LH: loop header
LB: loop body
LE: loop exit
PB: predicated region body
PF: predicated region fallthrough
CT: control target
= control target key end

     0   :  { %s989_s30 = smov 0   ;;  %s1173_s0 = inlined_call_operand.vmem [shape: f32[2,4,128], index: 0, kind: input, shape index: {}]   ;;  %s1174_s1 = inlined_call_operand.vmem [shape: f32[9,128], index: 1, kind: input, shape index: {}]   ;;  %s1175_s2 = inlined_call_operand.vmem [shape: f32[1,128], index: 2, kind: input, shape index: {}]   ;;  %s1176_s3 = inlined_call_operand.vmem [shape: f32[1,128], index: 3, kind: input, shape index: {}]   ;;  %s1177_s4 = inlined_call_operand.vmem [shape: f32[1,128], index: 4, kind: input, shape index: {}]   ;;  %s1178_s5 = inlined_call_operand.vmem [shape: bf16[128,256], index: 5, kind: input, shape index: {}]   ;;  %s1179_s6 = inlined_call_operand.vmem [shape: f32[1,256], index: 6, kind: input, shape index: {}]   ;;  %s1180_s7 = inlined_call_operand.vmem [shape: bf16[128,128], index: 7, kind: input, shape index: {}]   ;;  %s1181_s8 = inlined_call_operand.vmem [shape: f32[1,128], index: 8, kind: input, shape index: {}]   ;;  %s1182_s9 = inlined_call_operand.vmem [shape: f32[2,4,128], index: 9, kind: output, shape index: {}]  }
   0x1 LB: > { %s777_s10 = sadd.s32 4294967295, %s937_s30   ;;  %p781_p0 = scmp.ge.s32.totalorder %s937_s30, 1  ;;  %s937_s30 = sphi %s989_s30, %s19_s30  }
   0x2   : > { %p286_p1 = scmp.lt.s32.totalorder %s937_s30, 3 }
   0x4   : > { %p287_p2 = pnand %p781_p0, %p286_p1 }
   0x5   : > { %p320_p3 = scmp.lt.s32.totalorder (!%p287_p2), %s777_s10, 1 }
   0x6   : > { %290 = sbr.rel (%p287_p2) target bundleno = 505 (0x1f9), region = 56 }
   0xb   : > { %v329_v0 = vlaneseq  ;;  %s1184_s10 = smov (!%p320_p3, %s777_s10), 1  ;;  %v343_v3 = vld [vmem:[%s1174_s1] sm:$0xff]  ;;  %vm352_vm0 = vcmask 1042432   ;;  %vm354_vm2 = vcmask 1046528   ;;  %v916_v32 = vld [vmem:[%s1174_s1 + $0x8] ss:$0 sm:$0xff] }
   0xc   : > { %s782_s11 = sshll.u32 %s1184_s10, 2  ;;  %v356_v5 = vperm.slane %v343_v3, 0  ;;  %v359_v7 = vperm.slane %v343_v3, 3  ;;  %v365_v11 = vperm.slane %v343_v3, 6  ;;  %v376_v12 = vperm.slane %v343_v3, 1 }
   0xd   : > { %v330_v1 = vshrl.u32 %v329_v0, 7  ;;  %s323_s16 = scalar_lea.vmem %s1173_s0, %s782_s11  ;;  %v388_v15 = vperm.slane %v343_v3, 7  ;;  %v382_v18 = vperm.slane %v343_v3, 4  ;;  %v407_v30 = vperm.slane %v343_v3, 2  ;;  %v917_v55 = vld [vmem:[%s1175_s2] ss:$0 sm:$0xff]  ;;  %s327_s21 = scalar_lea.vmem %s1182_s9, %s782_s11 }
   0xe   : > { %v1008_v4 = vld [vmem:[%s323_s16] sm:$0xf]  ;;  %v413_v35 = vperm.slane %v343_v3, 5  ;;  %v421_v42 = vmul.f32 0.0, %v916_v32  ;;  %vm424_vm4 = vcmask 1041408   ;;  %vm435_vm5 = vcmask 1043456  }
   0xf   : > { %v335_v2 = vand.u32 1, %v330_v1  ;;  %v372_v8 = vrot.slane %v1008_v4, 5  ;;  %v390_v26 = vmul.f32 0.0, %v388_v15  ;;  %v842_v61 = vld [vmem:[%s1178_s5 + $0x70] sm:$0xf] }
  0x10   : > { %v426_v49 = vrot.slane %v421_v42, 6  ;;  %v899_v62 = vld [vmem:[%s1178_s5 + $0x74] sm:$0xf0]  ;;  %v898_v63 = vld [vmem:[%s1178_s5 + $0x74] sm:$0xf] }
  0x11   : > { %vm345_vm1 = vcmp.lt.s32.totalorder %v335_v2, 1  ;;  %vm398_vm3 = vcmp.ge.s32.totalorder %v335_v2, 1  ;;  %v374_v14 = vsel %vm352_vm0, 0.0, %v372_v8  ;;  %v394_v37 = vrot.slane %v390_v26, 5  ;;  %v844_v1 = vld [vmem:[%s1178_s5 + $0x78] sm:$0xf0] }
  0x12   : > { %v348_v6 = vsel %vm345_vm1, %v1008_v4, 0.0  ;;  %v401_v9 = vsel %vm398_vm3, %v1008_v4, 0.0  ;;  %v375_v17 = vsel %vm354_vm2, %v374_v14, 0.0  ;;  %v843_v0 = vor.u32 %v899_v62, %v842_v61  ;;  %v834_v3 = vld [vmem:[%s1178_s5 + $0x60] sm:$0xf] }
  0x13   : > { %v350_v10 = vrot.slane %v348_v6, 5  ;;  %v403_v13 = vrot.slane %v401_v9, 5  ;;  %v377_v24 = vmul.f32 %v376_v12, %v375_v17  ;;  %v389_v25 = vmul.f32 %v388_v15, %v375_v17  ;;  %v896_v6 = vld [vmem:[%s1178_s5 + $0x64] sm:$0xf]  ;;  %v836_v8 = vld [vmem:[%s1178_s5 + $0x68] sm:$0xf0] }
  0x14   : > { %v383_v29 = vmul.f32 %v382_v18, %v375_v17  ;;  %v847_v2 = vor.u32 %v898_v63, %v844_v1  ;;  %573 = vmatpush.bf16.msra.mxu0 %v843_v0  ;;  %v839_v9 = vor.u32 %v896_v6, %v836_v8  ;;  %v894_v12 = vld [vmem:[%s1178_s5 + $0x54] sm:$0xf]  ;;  %v828_v14 = vld [vmem:[%s1178_s5 + $0x58] sm:$0xf0]  ;;  %v893_v17 = vld [vmem:[%s1178_s5 + $0x44] sm:$0xf0] }
  0x15   : > { %v353_v16 = vsel %vm352_vm0, 0.0, %v350_v10  ;;  %v405_v20 = vsel %vm352_vm0, 0.0, %v403_v13  ;;  %v379_v34 = vrot.slane %v377_v24, 1  ;;  %v393_v36 = vrot.slane %v389_v25, 5  ;;  %v826_v10 = vld [vmem:[%s1178_s5 + $0x50] sm:$0xf] }
  0x16   : > { %v355_v19 = vsel %vm354_vm2, %v353_v16, 0.0  ;;  %v406_v31 = vsel %vm354_vm2, %v405_v20, 0.0  ;;  %v385_v39 = vrot.slane %v383_v29, 3  ;;  %586 = vmatpush.bf16.msra.mxu1 %v847_v2  ;;  %v831_v15 = vor.u32 %v894_v12, %v828_v14  ;;  %v818_v16 = vld [vmem:[%s1178_s5 + $0x40] sm:$0xf]  ;;  %v905_v6 = vld [vmem:[%s1180_s7 + $0x28] sm:$0xff] }
  0x17   : > { %v357_v21 = vmul.f32 %v356_v5, %v355_v19  ;;  %v360_v22 = vmul.f32 %v359_v7, %v355_v19  ;;  %v366_v23 = vmul.f32 %v365_v11, %v355_v19  ;;  %v408_v40 = vmul.f32 %v407_v30, %v406_v31  ;;  %v897_v5 = vld [vmem:[%s1178_s5 + $0x64] sm:$0xf0]  ;;  %v895_v11 = vld [vmem:[%s1178_s5 + $0x54] sm:$0xf0]  ;;  %v892_v18 = vld [vmem:[%s1178_s5 + $0x44] sm:$0xf] }
  0x18   : > { %v420_v41 = vmul.f32 %v916_v32, %v406_v31  ;;  %v414_v44 = vmul.f32 %v413_v35, %v406_v31  ;;  %v395_v45 = vsel %vm352_vm0, %v393_v36, %v394_v37  ;;  %v835_v7 = vor.u32 %v897_v5, %v834_v3  ;;  %v820_v20 = vld [vmem:[%s1178_s5 + $0x48] sm:$0xf0]  ;;  %v890_v24 = vld [vmem:[%s1178_s5 + $0x34] sm:$0xf]  ;;  %v812_v26 = vld [vmem:[%s1178_s5 + $0x38] sm:$0xf0] }
  0x19   : > { %v362_v27 = vrot.slane %v360_v22, 2  ;;  %v368_v28 = vrot.slane %v366_v23, 4  ;;  %v410_v47 = vrot.slane %v408_v40, 2  ;;  %v827_v13 = vor.u32 %v895_v11, %v826_v10  ;;  %v810_v22 = vld [vmem:[%s1178_s5 + $0x30] sm:$0xf]  ;;  %v903_v8 = vld [vmem:[%s1180_s7 + $0x18] sm:$0xff] }
  0x1a   : > { %v425_v48 = vrot.slane %v420_v41, 6  ;;  %v416_v51 = vrot.slane %v414_v44, 4  ;;  %574 = vmatpush.bf16.msra.mxu0 %v835_v7  ;;  %587 = vmatpush.bf16.msra.mxu1 %v839_v9  ;;  %v819_v19 = vor.u32 %v893_v17, %v818_v16  ;;  %v891_v23 = vld [vmem:[%s1178_s5 + $0x34] sm:$0xf0]  ;;  %v889_v29 = vld [vmem:[%s1178_s5 + $0x24] sm:$0xf0] }
  0x1b   : > { %v364_v33 = vadd.f32 %v362_v27, %v357_v21  ;;  %v823_v21 = vor.u32 %v892_v18, %v820_v20  ;;  %v811_v25 = vor.u32 %v891_v23, %v810_v22  ;;  %v815_v27 = vor.u32 %v890_v24, %v812_v26  ;;  %v888_v30 = vld [vmem:[%s1178_s5 + $0x24] sm:$0xf]  ;;  %v804_v32 = vld [vmem:[%s1178_s5 + $0x28] sm:$0xf0]  ;;  %v886_v36 = vld [vmem:[%s1178_s5 + $0x14] sm:$0xf] }
  0x1c   : > { %v427_v53 = vsel %vm424_vm4, %v425_v48, %v426_v49  ;;  %v807_v35 = vor.u32 %v888_v30, %v804_v32  ;;  %v796_v37 = vld [vmem:[%s1178_s5 + $0x18] sm:$0xf0]  ;;  %v786_v40 = vld [vmem:[%s1178_s5] sm:$0xf]  ;;  %v885_v41 = vld [vmem:[%s1178_s5 + $0x4] sm:$0xf0] }
  0x1d   : > { %v370_v38 = vadd.f32 %v368_v28, %v364_v33  ;;  %v802_v28 = vld [vmem:[%s1178_s5 + $0x20] sm:$0xf]  ;;  %v794_v33 = vld [vmem:[%s1178_s5 + $0x10] sm:$0xf]  ;;  %v788_v44 = vld [vmem:[%s1178_s5 + $0x8] sm:$0xf0] }
  0x1e   : > { %575 = vmatpush.bf16.msra.mxu0 %v827_v13  ;;  %588 = vmatpush.bf16.msra.mxu1 %v831_v15  ;;  %v803_v31 = vor.u32 %v889_v29, %v802_v28  ;;  %v918_v61 = vld [vmem:[%s1176_s3] ss:$0 sm:$0xff]  ;;  %v906_v5 = vld [vmem:[%s1180_s7 + $0x30] sm:$0xff]  ;;  %v901_v13 = vld [vmem:[%s1180_s7 + $0x8] sm:$0xff] }
  0x1f   : > { %v381_v43 = vadd.f32 %v379_v34, %v370_v38  ;;  %v887_v34 = vld [vmem:[%s1178_s5 + $0x14] sm:$0xf0]  ;;  %v919_v0 = vld [vmem:[%s1177_s4] ss:$0 sm:$0xff]  ;;  %v902_v9 = vld [vmem:[%s1180_s7 + $0x10] sm:$0xff] }
  0x20   : > { %v795_v38 = vor.u32 %v887_v34, %v794_v33  ;;  %v904_v7 = vld [vmem:[%s1180_s7 + $0x20] sm:$0xff] }
  0x21   : > { %v387_v46 = vadd.f32 %v385_v39, %v381_v43  ;;  %v799_v39 = vor.u32 %v886_v36, %v796_v37  ;;  %v884_v43 = vld [vmem:[%s1178_s5 + $0x4] sm:$0xf]  ;;  %v487_v10 = vld [vmem:[%s1179_s6] sm:$0x3] }
  0x22   : > { %576 = vmatpush.bf16.msra.mxu0 %v819_v19  ;;  %589 = vmatpush.bf16.msra.mxu1 %v823_v21  ;;  %v489_v11 = vperm.slane %v487_v10, 0  ;;  %v490_v12 = vperm.slane %v487_v10, 1  ;;  %v900_v16 = vld [vmem:[%s1180_s7] sm:$0xff] }
  0x23   : > { %v397_v50 = vadd.f32 %v395_v45, %v387_v46  ;;  %v787_v45 = vor.u32 %v885_v41, %v786_v40  ;;  %v791_v46 = vor.u32 %v884_v43, %v788_v44 }
  0x25   : > { %v412_v52 = vadd.f32 %v410_v47, %v397_v50 }
  0x26   : > { %577 = vmatpush.bf16.msra.mxu0 %v811_v25  ;;  %590 = vmatpush.bf16.msra.mxu1 %v815_v27 }
  0x27   : > { %v418_v54 = vadd.f32 %v416_v51, %v412_v52 }
  0x29   : > { %v429_v56 = vadd.f32 %v427_v53, %v418_v54 }
  0x2a   : > { %578 = vmatpush.bf16.msra.mxu0 %v803_v31  ;;  %591 = vmatpush.bf16.msra.mxu1 %v807_v35 }
  0x2b   : > { %v1026_v57 = vadd.f32 %v917_v55, %v429_v56 }
  0x2d   : > { %v436_v58 = vsel %vm435_vm5, %v1026_v57, 0.0  ;;  %v440_v59 = vmul.f32 %v1026_v57, %v1026_v57 }
  0x2e   : > { %437 = vadd.xlane.f32.xlu0 %v436_v58  ;;  %579 = vmatpush.bf16.msra.mxu0 %v795_v38 }
  0x2f   : > { %v441_v60 = vsel %vm435_vm5, %v440_v59, 0.0  ;;  %592 = vmatpush.bf16.msra.mxu1 %v799_v39 }
  0x32   : > { %580 = vmatpush.bf16.msra.mxu0 %v787_v45 }
  0x33   : > { %593 = vmatpush.bf16.msra.mxu1 %v791_v46 }
  0x36   : > { %442 = vadd.xlane.f32.xlu0 %v441_v60 }
  0xa1   : > { %v438_v42 = vpop.xlane.xlu0 %437 }
  0xa2   : > { %v439_v47 = vmul.f32 0.015625, %v438_v42 }
  0xa4   : > { %v445_v49 = vmul.f32 %v439_v47, %v439_v47  ;;  %v447_v60 = vsub.f32 %v1026_v57, %v439_v47  ;;  %v907_v57 = vld [vmem:[%s1180_s7 + $0x38] sm:$0xff] }
  0xa5   : > { %709 = vmatpush.bf16.msra.mxu2 %v907_v57 }
  0xa9   : > { %v443_v48 = vpop.xlane.xlu0 %442  ;;  %710 = vmatpush.bf16.msra.mxu2 %v906_v5 }
  0xaa   : > { %v444_v50 = vmul.f32 0.015625, %v443_v48 }
  0xac   : > { %v446_v51 = vsub.f32 %v444_v50, %v445_v49 }
  0xad   : > { %711 = vmatpush.bf16.msra.mxu2 %v905_v6 }
  0xae   : > { %v448_v52 = vadd.f32 1e-05, %v446_v51  ;;  %v920_v51 = vld [vmem:[%s1181_s8] ss:$0 sm:$0xff] }
  0xb0   : > { %921 = vrsqrt.f32 %v448_v52  ;;  %vm455_vm7 = vweird.f32 %v448_v52 }
  0xb1   : > { %712 = vmatpush.bf16.msra.mxu2 %v904_v7 }
  0xb5   : > { %713 = vmatpush.bf16.msra.mxu2 %v903_v8 }
  0xb6   : > { %v922_v53 = vpop.eup %921 }
  0xb7   : > { %v450_v54 = vmul.f32 %v922_v53, %v448_v52  ;;  %vm456_vm6 = vweird.f32 %v922_v53 }
  0xb8   : > { %vm457_vm8 = vmor %vm455_vm7, %vm456_vm6 }
  0xb9   : > { %v451_v55 = vmul.f32 %v922_v53, %v450_v54  ;;  %714 = vmatpush.bf16.msra.mxu2 %v902_v9 }
  0xbb   : > { %v452_v56 = vmul.f32 0.5, %v451_v55 }
  0xbd   : > { %v453_v58 = vsub.f32 1.5, %v452_v56  ;;  %715 = vmatpush.bf16.msra.mxu2 %v901_v13 }
  0xbf   : > { %v454_v59 = vmul.f32 %v922_v53, %v453_v58 }
  0xc1   : > { %v458_v62 = vsel %vm457_vm8, %v922_v53, %v454_v59  ;;  %716 = vmatpush.bf16.msra.mxu2 %v900_v16 }
  0xc2   : > { %v459_v63 = vmul.f32 %v458_v62, %v447_v60 }
  0xc4   : > { %v464_v1 = vmul.f32 %v918_v61, %v459_v63 }
  0xc6   : > { %v469_v2 = vadd.f32 %v919_v0, %v464_v1 }
  0xc8   : > { %v470_v3 = vpack.c.bf16 %v469_v2, %v469_v2 }
  0xca   : > { %581 = vmatmul.bf16.vlgmr.msra.gmra.mxu0 %v470_v3  ;;  %594 = vmatmul.bf16.vlgmr.msra.gmra.mxu1 %v470_v3 }
 0x147   : > { %v582_v14 = vpop.f32.mrf.mxu0  ;;  %v595_v15 = vpop.f32.mrf.mxu1 }
 0x148   : > { %v583_v17 = vadd.f32 %v582_v14, %v489_v11  ;;  %v596_v18 = vadd.f32 %v595_v15, %v490_v12 }
 0x14a   : > { %v848_v19 = vmul.f32 -1.442695, %v583_v17  ;;  %v849_v20 = vmul.f32 -1.442695, %v596_v18 }
 0x14c   : > { %923 = vpow2.f32 %v848_v19 }
 0x14d   : > { %925 = vpow2.f32 %v849_v20 }
 0x14f   : > { %v584_v21 = vpop.f32.mrf.mxu0  ;;  %v597_v22 = vpop.f32.mrf.mxu1 }
 0x152   : > { %v924_v23 = vpop.eup %923 }
 0x153   : > { %v926_v24 = vpop.eup %925  ;;  %v602_v25 = vadd.f32 1.0, %v924_v23 }
 0x154   : > { %v622_v26 = vadd.f32 1.0, %v926_v24 }
 0x155   : > { %927 = vrcp.f32 %v602_v25  ;;  %v614_v32 = vand.u32 2147483648, %v602_v25  ;;  %v612_v35 = vand.u32 2147483647, %v602_v25  ;;  %vm608_vm11 = vweird.f32 %v602_v25 }
 0x156   : > { %929 = vrcp.f32 %v622_v26  ;;  %v634_v36 = vand.u32 2147483648, %v622_v26  ;;  %v632_v38 = vand.u32 2147483647, %v622_v26  ;;  %vm628_vm13 = vweird.f32 %v622_v26 }
 0x157   : > { %v615_v40 = vor.u32 1.1754944e-38, %v614_v32  ;;  %vm613_vm14 = vcmp.eq.f32.partialorder %v612_v35, 8.507059e+37 }
 0x158   : > { %v635_v43 = vor.u32 1.1754944e-38, %v634_v36  ;;  %vm633_vm0 = vcmp.eq.f32.partialorder %v632_v38, 8.507059e+37 }
 0x15b   : > { %v928_v27 = vpop.eup %927 }
 0x15c   : > { %v930_v28 = vpop.eup %929  ;;  %v604_v29 = vmul.f32 %v928_v27, %v602_v25  ;;  %vm609_vm9 = vweird.f32 %v928_v27 }
 0x15d   : > { %v624_v30 = vmul.f32 %v930_v28, %v622_v26  ;;  %vm629_vm10 = vweird.f32 %v930_v28  ;;  %vm610_vm12 = vmor %vm608_vm11, %vm609_vm9 }
 0x15e   : > { %v605_v31 = vsub.f32 1.0, %v604_v29  ;;  %vm630_vm15 = vmor %vm628_vm13, %vm629_vm10 }
 0x15f   : > { %v625_v33 = vsub.f32 1.0, %v624_v30 }
 0x160   : > { %v606_v34 = vmul.f32 %v928_v27, %v605_v31 }
 0x161   : > { %v626_v37 = vmul.f32 %v930_v28, %v625_v33 }
 0x162   : > { %v607_v39 = vadd.f32 %v928_v27, %v606_v34 }
 0x163   : > { %v627_v41 = vadd.f32 %v930_v28, %v626_v37 }
 0x164   : > { %v611_v42 = vsel %vm610_vm12, %v928_v27, %v607_v39 }
 0x165   : > { %v616_v44 = vsel %vm613_vm14, %v615_v40, %v611_v42  ;;  %v631_v45 = vsel %vm630_vm15, %v930_v28, %v627_v41 }
 0x166   : > { %v618_v46 = vmul.f32 %v616_v44, %v583_v17  ;;  %v636_v47 = vsel %vm633_vm0, %v635_v43, %v631_v45 }
 0x167   : > { %v638_v48 = vmul.f32 %v636_v47, %v596_v18 }
 0x169   : > { %v639_v49 = vmul.f32 %v638_v48, %v618_v46 }
 0x16b   : > { %v640_v50 = vpack.c.bf16 %v639_v49, %v639_v49 }
 0x16d   : > { %717 = vmatmul.bf16.vlgmr.msra.gmra.mxu2 %v640_v50 }
 0x1f0   : > { %v718_v52 = vpop.f32.mrf.mxu2 }
 0x1f1   : > { %v719_v53 = vadd.f32 %v920_v51, %v718_v52 }
 0x1f3   : > { %v722_v54 = vadd.f32 %v719_v53, %v1008_v4 }
 0x1f5   : > { %723 = vst [vmem:[%s327_s21] sm:$0xf] %v722_v54 }
 0x1f8   : > { %v720_v55 = vpop.f32.mrf.mxu2 }
 0x1f9 PF: > { %s19_s30 = sadd.s32 1, %s937_s30  }
 0x1fa   : > { %p16_p4 = scmp.ge.s32.totalorder %s19_s30, 4  }
 0x1fc   :  { %18 = sbr.rel (!%p16_p4) target bundleno = 1 (0x1), region = 86 }

// kernel: _lambda_.9
= control target key start
LH: loop header
LB: loop body
LE: loop exit
PB: predicated region body
PF: predicated region fallthrough
CT: control target
= control target key end

     0   :  { %s129_s0 = inlined_call_operand.vmem [shape: f32[8,128], index: 0, kind: input, shape index: {}]   ;;  %s130_s1 = inlined_call_operand.vmem [shape: f32[1,128], index: 1, kind: input, shape index: {}]   ;;  %s131_s2 = inlined_call_operand.vmem [shape: f32[1,128], index: 2, kind: input, shape index: {}]   ;;  %s132_s3 = inlined_call_operand.hbm [shape: f32[8,128], index: 3, kind: output, shape index: {}]  }
   0x1   :  { %v15_v0 = vld [vmem:[%s129_s0] sm:$0xff] }
   0x2   :  { %8 = vsyncpa [#allocation3], 0  ;;  %16 = vadd.xlane.f32.xlu0 %v15_v0  ;;  %v19_v1 = vmul.f32 %v15_v0, %v15_v0  ;;  %v66_v16 = vld [vmem:[%s130_s1] ss:$0 sm:$0xff]  ;;  %s96_s17 = smov [#allocation2]   ;;  %s56_s21 = sshll.u32 %s132_s3, 4  ;;  %s57_s21 = int_to_ptr.hbm [resolvable:$true] %s56_s21 }
   0x3   :  { %v67_v19 = vld [vmem:[%s131_s2] ss:$0 sm:$0xff]  ;;  %s54_s18 = sshll.u32 %s96_s17, 4  ;;  %s55_s18 = int_to_ptr.vmem [resolvable:$true] %s54_s18 }
   0xa   :  { %20 = vadd.xlane.f32.xlu0 %v19_v1 }
  0x75   :  { %v17_v2 = vpop.xlane.xlu0 %16 }
  0x76   :  { %v18_v3 = vmul.f32 0.015625, %v17_v2 }
  0x78   :  { %v23_v5 = vmul.f32 %v18_v3, %v18_v3  ;;  %v25_v15 = vsub.f32 %v15_v0, %v18_v3 }
  0x7d   :  { %v21_v4 = vpop.xlane.xlu0 %20 }
  0x7e   :  { %v22_v6 = vmul.f32 0.015625, %v21_v4 }
  0x80   :  { %v24_v7 = vsub.f32 %v22_v6, %v23_v5 }
  0x82   :  { %v26_v8 = vadd.f32 1e-05, %v24_v7 }
  0x84   :  { %68 = vrsqrt.f32 %v26_v8  ;;  %vm33_vm1 = vweird.f32 %v26_v8 }
  0x8a   :  { %v69_v9 = vpop.eup %68 }
  0x8b   :  { %v28_v10 = vmul.f32 %v69_v9, %v26_v8  ;;  %vm34_vm0 = vweird.f32 %v69_v9 }
  0x8c   :  { %vm35_vm2 = vmor %vm33_vm1, %vm34_vm0 }
  0x8d   :  { %v29_v11 = vmul.f32 %v69_v9, %v28_v10 }
  0x8f   :  { %v30_v12 = vmul.f32 0.5, %v29_v11 }
  0x91   :  { %v31_v13 = vsub.f32 1.5, %v30_v12 }
  0x93   :  { %v32_v14 = vmul.f32 %v69_v9, %v31_v13 }
  0x95   :  { %v36_v17 = vsel %vm35_vm2, %v69_v9, %v32_v14 }
  0x96   :  { %v37_v18 = vmul.f32 %v36_v17, %v25_v15 }
  0x98   :  { %v42_v20 = vmul.f32 %v66_v16, %v37_v18 }
  0x9a   :  { %v47_v21 = vadd.f32 %v67_v19, %v42_v20 }
  0x9c   :  { %48 = vst [vmem:[#allocation2] sm:$0xff] %v47_v21 }
  0x9d   :  { %59 = dma.vmem_to_hbm [thread:$0]  %s55_s18, 128, %s57_s21, [#allocation3]  }
  0x9e   :  { %94 = dma.done.wait [#allocation3], 128  }
  0x9f   :  { %95 = vsyncadd [#allocation3], 4294967168 }
  0xa0   :  { %64 = vsyncpa [#allocation3], 1 }

</bundles_post_ra>
